<compile_context>
chip_gen: v7x
topology: tpu7x:2x2x1
jax: 0.10.0
libtpu: 0.0.40
codegen_flags: <defaults>
</compile_context>

<pallas_src>
from math import sqrt

import jax
import jax.numpy as jnp
from jax.experimental import pallas as pl
from jax.experimental.pallas import tpu as pltpu

# ----------------------------- config ---------------------------------------
VOCAB = 100
MAX_POS = 16
HIDDEN = 32
NUM_HEADS = 4
HEAD_DIM = HIDDEN // NUM_HEADS
INTERMEDIATE = 64
NUM_LAYERS = 2
BATCH = 2
SEQ = 8
LN_EPS_EMB = 1e-12     # Embeddings.layer_norm eps
LN_EPS_LAYER = 1e-5    # nn.LayerNorm default eps


# --------------------------- shared math ------------------------------------
def _layer_norm(x, gamma, beta, eps):
    mean = jnp.mean(x, axis=-1, keepdims=True)
    var = jnp.mean(jnp.square(x - mean), axis=-1, keepdims=True)
    return (x - mean) * jax.lax.rsqrt(var + eps) * gamma + beta


def _gelu_exact(x):
    # nn.GELU() default = exact erf formulation
    return 0.5 * x * (1.0 + jax.lax.erf(x / jnp.sqrt(2.0).astype(x.dtype)))


# ---------------------------- fused Pallas kernel ----------------------------
def fused_encoder_kernel(x_ref, negm_ref, hm_ref, emb_g_ref, emb_b_ref,
                         ln1g_ref, ln1b_ref, wq_ref, bq_ref, wk_ref, bk_ref,
                         wv_ref, bv_ref, wo_ref, bo_ref, ln2g_ref, ln2b_ref,
                         w1_ref, b1_ref, w2_ref, b2_ref, out_ref):
    """Embedding LayerNorm + NUM_LAYERS pre-LN encoder layers, whole batch.

    Activations are (T, H) with T = BATCH * SEQ.  Attention is restricted to
    within-sequence pairs with an additive block-diagonal mask; per-head score
    and context extraction is done with lane masks (no slicing of the lane
    axis), so Q/K/V and the output projection are full-width matmuls.
    """
    neg_mask = negm_ref[...]                                # (T, T), hoisted
    head_masks = [hm_ref[h] for h in range(NUM_HEADS)]      # each (1, H) {0,1}

    # --- embedding LayerNorm (BERT Embeddings, eps=1e-12) ---
    x = _layer_norm(x_ref[...], emb_g_ref[...], emb_b_ref[...], LN_EPS_EMB)

    # --- encoder layers, statically unrolled ---
    for li in range(NUM_LAYERS):
        # ---- multi-head self-attention (pre-LN) ----
        h = _layer_norm(x, ln1g_ref[li], ln1b_ref[li], LN_EPS_LAYER)
        # Full-width projections (W_q / b_q are pre-scaled by 1/sqrt(HEAD_DIM)).
        q = jnp.dot(h, wq_ref[li], preferred_element_type=jnp.float32) + bq_ref[li]
        k = jnp.dot(h, wk_ref[li], preferred_element_type=jnp.float32) + bk_ref[li]
        v = jnp.dot(h, wv_ref[li], preferred_element_type=jnp.float32) + bv_ref[li]

        ctx = None
        for hd in range(NUM_HEADS):                         # static unroll
            hm = head_masks[hd]                             # (1, H)
            # Masking Q's lanes restricts the contraction to this head's dims.
            s = jax.lax.dot_general(q * hm, k, (((1,), (1,)), ((), ())),
                                    preferred_element_type=jnp.float32)  # (T, T)
            s = s + neg_mask                                 # cross-sequence -> -1e30
            s = s - jnp.max(s, axis=-1, keepdims=True)       # stable softmax (XLU)
            p = jnp.exp(s)
            p = p * pl.reciprocal(jnp.sum(p, axis=-1, keepdims=True), approx=True)
            # Full-width P @ V; keep only this head's lanes -> concatenated layout.
            ctx_h = jnp.dot(p, v, preferred_element_type=jnp.float32) * hm
            ctx = ctx_h if ctx is None else ctx + ctx_h

        attn = jnp.dot(ctx, wo_ref[li], preferred_element_type=jnp.float32) + bo_ref[li]
        x = x + attn

        # ---- feed-forward (pre-LN) ----
        h2 = _layer_norm(x, ln2g_ref[li], ln2b_ref[li], LN_EPS_LAYER)
        f = jnp.dot(h2, w1_ref[li], preferred_element_type=jnp.float32) + b1_ref[li]
        f = _gelu_exact(f)
        f = jnp.dot(f, w2_ref[li], preferred_element_type=jnp.float32) + b2_ref[li]
        x = x + f

    # NOTE: output is only T*H = 512 floats; a relayout to a lane-dense slab
    # would cost about as much as the masked stores it removes, so keep (T, H).
    out_ref[...] = x


# --------------------------- wrapper ----------------------------------------
def transformer_encoder(input_ids, params):
    """Embedding gather (plain-JAX glue) + one fused Pallas kernel call."""
    B, S = input_ids.shape
    T = B * S
    tok = params["token_table"][input_ids]                  # (B, S, H) gather
    pos = params["pos_table"][:S]                           # (S, H)
    x0 = (tok + pos[None]).reshape(T, HIDDEN)               # (T, H)

    # additive block-diagonal attention mask: 0 within a sequence, -1e30 across
    row_seq = jnp.arange(T, dtype=jnp.int32) // S
    neg_mask = jnp.where(row_seq[:, None] == row_seq[None, :],
                         0.0, -1e30).astype(jnp.float32)    # (T, T)

    # per-head lane masks: hm[h, 0, d] = 1 iff lane d belongs to head h
    head_id = jnp.arange(HIDDEN, dtype=jnp.int32) // HEAD_DIM
    head_masks = (head_id[None, :] ==
                  jnp.arange(NUM_HEADS, dtype=jnp.int32)[:, None])
    head_masks = head_masks.astype(jnp.float32)[:, None, :]  # (NH, 1, H)

    L = params["layers"]
    stack = lambda name: jnp.stack([p[name] for p in L])    # (NL, ...)

    scale = 1.0 / sqrt(HEAD_DIM)                             # folded into W_q/b_q
    inputs = (
        x0, neg_mask, head_masks,
        params["emb_ln_g"], params["emb_ln_b"],
        stack("ln1_g"), stack("ln1_b"),
        stack("wq") * scale, stack("bq") * scale,
        stack("wk"), stack("bk"),
        stack("wv"), stack("bv"),
        stack("wo"), stack("bo"),
        stack("ln2_g"), stack("ln2_b"),
        stack("w1"), stack("b1"), stack("w2"), stack("b2"),
    )

    out = pl.pallas_call(
        fused_encoder_kernel,
        out_shape=jax.ShapeDtypeStruct((T, HIDDEN), jnp.float32),
        in_specs=[pl.BlockSpec(memory_space=pltpu.MemorySpace.VMEM)] * len(inputs),
        out_specs=pl.BlockSpec(memory_space=pltpu.MemorySpace.VMEM),
    )(*inputs)
    return out.reshape(B, S, HIDDEN)


# ------------------------------ reference -----------------------------------
def reference_encoder(input_ids, params):
    tok = params["token_table"][input_ids]
    pos = params["pos_table"][: input_ids.shape[1]]
    x = _layer_norm(tok + pos[None], params["emb_ln_g"], params["emb_ln_b"],
                    LN_EPS_EMB)
    for p in params["layers"]:
        h = _layer_norm(x, p["ln1_g"], p["ln1_b"], LN_EPS_LAYER)
        q = h @ p["wq"] + p["bq"]
        k = h @ p["wk"] + p["bk"]
        v = h @ p["wv"] + p["bv"]
        outs = []
        for hd in range(NUM_HEADS):
            sl = slice(hd * HEAD_DIM, (hd + 1) * HEAD_DIM)
            s = jnp.einsum("bqd,bkd->bqk", q[..., sl], k[..., sl]) / sqrt(HEAD_DIM)
            w = jax.nn.softmax(s, axis=-1)
            outs.append(jnp.einsum("bqk,bkd->bqd", w, v[..., sl]))
        attn = jnp.concatenate(outs, axis=-1) @ p["wo"] + p["bo"]
        x = x + attn
        h2 = _layer_norm(x, p["ln2_g"], p["ln2_b"], LN_EPS_LAYER)
        f = _gelu_exact(h2 @ p["w1"] + p["b1"]) @ p["w2"] + p["b2"]
        x = x + f
    return x


# ------------------------------- params -------------------------------------
def init_params(key):
    def nrm(k, shape, scale=0.02):
        return (scale * jax.random.normal(k, shape)).astype(jnp.float32)

    keys = jax.random.split(key, 4 + NUM_LAYERS)
    params = {
        "token_table": nrm(keys[0], (VOCAB, HIDDEN)),
        "pos_table": nrm(keys[1], (MAX_POS, HIDDEN)),
        "emb_ln_g": jnp.ones((1, HIDDEN), jnp.float32),
        "emb_ln_b": jnp.zeros((1, HIDDEN), jnp.float32),
        "layers": [],
    }
    for li in range(NUM_LAYERS):
        lk = jax.random.split(keys[4 + li], 8)
        params["layers"].append({
            "ln1_g": jnp.ones((1, HIDDEN), jnp.float32),
            "ln1_b": jnp.zeros((1, HIDDEN), jnp.float32),
            "wq": nrm(lk[0], (HIDDEN, HIDDEN)),
            "bq": nrm(lk[1], (1, HIDDEN)),
            "wk": nrm(lk[2], (HIDDEN, HIDDEN)),
            "bk": nrm(lk[3], (1, HIDDEN)),
            "wv": nrm(lk[4], (HIDDEN, HIDDEN)),
            "bv": nrm(lk[5], (1, HIDDEN)),
            "wo": nrm(lk[6], (HIDDEN, HIDDEN)),
            "bo": jnp.zeros((1, HIDDEN), jnp.float32),
            "ln2_g": jnp.ones((1, HIDDEN), jnp.float32),
            "ln2_b": jnp.zeros((1, HIDDEN), jnp.float32),
            "w1": nrm(lk[7], (HIDDEN, INTERMEDIATE)),
            "b1": jnp.zeros((1, INTERMEDIATE), jnp.float32),
            "w2": nrm(jax.random.fold_in(lk[7], 1), (INTERMEDIATE, HIDDEN)),
            "b2": jnp.zeros((1, HIDDEN), jnp.float32),
        })
    return params


# -------------------------------- main ---------------------------------------
if __name__ == "__main__":
    key = jax.random.PRNGKey(0)
    k_ids, k_params = jax.random.split(key)
    input_ids = jax.random.randint(k_ids, (BATCH, SEQ), 0, VOCAB)
    params = init_params(k_params)

    # TODO(synk): nn.Dropout layers are identity here (eval-mode forward).
    fwd = jax.jit(transformer_encoder)
    out = jax.block_until_ready(fwd(input_ids, params))

    ref = reference_encoder(input_ids, params)
    assert out.shape == (BATCH, SEQ, HIDDEN)
    err = jnp.max(jnp.abs(out - ref))
    assert jnp.allclose(out, ref, atol=1e-4, rtol=1e-4), f"max abs err {err}"

    print("KERNEL_OK")
</pallas_src>

<mosaic_0001>
module attributes {stable_mosaic.version = 11 : i64} {
  func.func @fused_encoder_kernel(%arg0: memref<16x32xf32, #tpu.memory_space<vmem>>, %arg1: memref<16x16xf32, #tpu.memory_space<vmem>>, %arg2: memref<4x1x32xf32, #tpu.memory_space<vmem>>, %arg3: memref<1x32xf32, #tpu.memory_space<vmem>>, %arg4: memref<1x32xf32, #tpu.memory_space<vmem>>, %arg5: memref<2x1x32xf32, #tpu.memory_space<vmem>>, %arg6: memref<2x1x32xf32, #tpu.memory_space<vmem>>, %arg7: memref<2x32x32xf32, #tpu.memory_space<vmem>>, %arg8: memref<2x1x32xf32, #tpu.memory_space<vmem>>, %arg9: memref<2x32x32xf32, #tpu.memory_space<vmem>>, %arg10: memref<2x1x32xf32, #tpu.memory_space<vmem>>, %arg11: memref<2x32x32xf32, #tpu.memory_space<vmem>>, %arg12: memref<2x1x32xf32, #tpu.memory_space<vmem>>, %arg13: memref<2x32x32xf32, #tpu.memory_space<vmem>>, %arg14: memref<2x1x32xf32, #tpu.memory_space<vmem>>, %arg15: memref<2x1x32xf32, #tpu.memory_space<vmem>>, %arg16: memref<2x1x32xf32, #tpu.memory_space<vmem>>, %arg17: memref<2x32x64xf32, #tpu.memory_space<vmem>>, %arg18: memref<2x1x64xf32, #tpu.memory_space<vmem>>, %arg19: memref<2x64x32xf32, #tpu.memory_space<vmem>>, %arg20: memref<2x1x32xf32, #tpu.memory_space<vmem>>, %arg21: memref<16x32xf32, #tpu.memory_space<vmem>>) attributes {dimension_semantics = [], scalar_prefetch = 0 : i64, scratch_operands = 0 : i64, tpu.core_type = #tpu.core_type<tc>} {
    %c0 = arith.constant 0 : index
    %c0_0 = arith.constant 0 : index
    %0 = vector.load %arg1[%c0, %c0_0] : memref<16x16xf32, #tpu.memory_space<vmem>>, vector<16x16xf32>
    %c0_1 = arith.constant 0 : index
    %c0_2 = arith.constant 0 : index
    %c0_3 = arith.constant 0 : index
    %1 = vector.load %arg2[%c0_1, %c0_2, %c0_3] : memref<4x1x32xf32, #tpu.memory_space<vmem>>, vector<1x1x32xf32>
    %2 = vector.shape_cast %1 : vector<1x1x32xf32> to vector<1x32xf32>
    %c1 = arith.constant 1 : index
    %c0_4 = arith.constant 0 : index
    %c0_5 = arith.constant 0 : index
    %3 = vector.load %arg2[%c1, %c0_4, %c0_5] : memref<4x1x32xf32, #tpu.memory_space<vmem>>, vector<1x1x32xf32>
    %4 = vector.shape_cast %3 : vector<1x1x32xf32> to vector<1x32xf32>
    %c2 = arith.constant 2 : index
    %c0_6 = arith.constant 0 : index
    %c0_7 = arith.constant 0 : index
    %5 = vector.load %arg2[%c2, %c0_6, %c0_7] : memref<4x1x32xf32, #tpu.memory_space<vmem>>, vector<1x1x32xf32>
    %6 = vector.shape_cast %5 : vector<1x1x32xf32> to vector<1x32xf32>
    %c3 = arith.constant 3 : index
    %c0_8 = arith.constant 0 : index
    %c0_9 = arith.constant 0 : index
    %7 = vector.load %arg2[%c3, %c0_8, %c0_9] : memref<4x1x32xf32, #tpu.memory_space<vmem>>, vector<1x1x32xf32>
    %8 = vector.shape_cast %7 : vector<1x1x32xf32> to vector<1x32xf32>
    %c0_10 = arith.constant 0 : index
    %c0_11 = arith.constant 0 : index
    %9 = vector.load %arg0[%c0_10, %c0_11] : memref<16x32xf32, #tpu.memory_space<vmem>>, vector<16x32xf32>
    %c0_12 = arith.constant 0 : index
    %c0_13 = arith.constant 0 : index
    %10 = vector.load %arg3[%c0_12, %c0_13] : memref<1x32xf32, #tpu.memory_space<vmem>>, vector<1x32xf32>
    %c0_14 = arith.constant 0 : index
    %c0_15 = arith.constant 0 : index
    %11 = vector.load %arg4[%c0_14, %c0_15] : memref<1x32xf32, #tpu.memory_space<vmem>>, vector<1x32xf32>
    %cst = arith.constant dense<0.000000e+00> : vector<16xf32>
    %12 = vector.multi_reduction <add>, %9, %cst [1] : vector<16x32xf32> to vector<16xf32>
    %13 = vector.shape_cast %12 : vector<16xf32> to vector<16x1xf32>
    %cst_16 = arith.constant 3.200000e+01 : f32
    %14 = vector.broadcast %cst_16 : f32 to vector<16x1xf32>
    %15 = arith.divf %13, %14 : vector<16x1xf32>
    %16 = vector.broadcast %15 : vector<16x1xf32> to vector<16x32xf32>
    %17 = arith.subf %9, %16 : vector<16x32xf32>
    %18 = arith.mulf %17, %17 : vector<16x32xf32>
    %cst_17 = arith.constant dense<0.000000e+00> : vector<16xf32>
    %19 = vector.multi_reduction <add>, %18, %cst_17 [1] : vector<16x32xf32> to vector<16xf32>
    %20 = vector.shape_cast %19 : vector<16xf32> to vector<16x1xf32>
    %cst_18 = arith.constant 3.200000e+01 : f32
    %21 = vector.broadcast %cst_18 : f32 to vector<16x1xf32>
    %22 = arith.divf %20, %21 : vector<16x1xf32>
    %23 = vector.broadcast %15 : vector<16x1xf32> to vector<16x32xf32>
    %24 = arith.subf %9, %23 : vector<16x32xf32>
    %cst_19 = arith.constant 9.99999996E-13 : f32
    %25 = vector.broadcast %cst_19 : f32 to vector<16x1xf32>
    %26 = arith.addf %22, %25 : vector<16x1xf32>
    %27 = math.rsqrt %26 : vector<16x1xf32>
    %28 = vector.broadcast %27 : vector<16x1xf32> to vector<16x32xf32>
    %29 = arith.mulf %24, %28 : vector<16x32xf32>
    %30 = vector.broadcast %10 : vector<1x32xf32> to vector<16x32xf32>
    %31 = arith.mulf %29, %30 : vector<16x32xf32>
    %32 = vector.broadcast %11 : vector<1x32xf32> to vector<16x32xf32>
    %33 = arith.addf %31, %32 : vector<16x32xf32>
    %c0_20 = arith.constant 0 : index
    %c0_21 = arith.constant 0 : index
    %c0_22 = arith.constant 0 : index
    %34 = vector.load %arg5[%c0_20, %c0_21, %c0_22] : memref<2x1x32xf32, #tpu.memory_space<vmem>>, vector<1x1x32xf32>
    %35 = vector.shape_cast %34 : vector<1x1x32xf32> to vector<1x32xf32>
    %c0_23 = arith.constant 0 : index
    %c0_24 = arith.constant 0 : index
    %c0_25 = arith.constant 0 : index
    %36 = vector.load %arg6[%c0_23, %c0_24, %c0_25] : memref<2x1x32xf32, #tpu.memory_space<vmem>>, vector<1x1x32xf32>
    %37 = vector.shape_cast %36 : vector<1x1x32xf32> to vector<1x32xf32>
    %cst_26 = arith.constant dense<0.000000e+00> : vector<16xf32>
    %38 = vector.multi_reduction <add>, %33, %cst_26 [1] : vector<16x32xf32> to vector<16xf32>
    %39 = vector.shape_cast %38 : vector<16xf32> to vector<16x1xf32>
    %cst_27 = arith.constant 3.200000e+01 : f32
    %40 = vector.broadcast %cst_27 : f32 to vector<16x1xf32>
    %41 = arith.divf %39, %40 : vector<16x1xf32>
    %42 = vector.broadcast %41 : vector<16x1xf32> to vector<16x32xf32>
    %43 = arith.subf %33, %42 : vector<16x32xf32>
    %44 = arith.mulf %43, %43 : vector<16x32xf32>
    %cst_28 = arith.constant dense<0.000000e+00> : vector<16xf32>
    %45 = vector.multi_reduction <add>, %44, %cst_28 [1] : vector<16x32xf32> to vector<16xf32>
    %46 = vector.shape_cast %45 : vector<16xf32> to vector<16x1xf32>
    %cst_29 = arith.constant 3.200000e+01 : f32
    %47 = vector.broadcast %cst_29 : f32 to vector<16x1xf32>
    %48 = arith.divf %46, %47 : vector<16x1xf32>
    %49 = vector.broadcast %41 : vector<16x1xf32> to vector<16x32xf32>
    %50 = arith.subf %33, %49 : vector<16x32xf32>
    %cst_30 = arith.constant 9.99999974E-6 : f32
    %51 = vector.broadcast %cst_30 : f32 to vector<16x1xf32>
    %52 = arith.addf %48, %51 : vector<16x1xf32>
    %53 = math.rsqrt %52 : vector<16x1xf32>
    %54 = vector.broadcast %53 : vector<16x1xf32> to vector<16x32xf32>
    %55 = arith.mulf %50, %54 : vector<16x32xf32>
    %56 = vector.broadcast %35 : vector<1x32xf32> to vector<16x32xf32>
    %57 = arith.mulf %55, %56 : vector<16x32xf32>
    %58 = vector.broadcast %37 : vector<1x32xf32> to vector<16x32xf32>
    %59 = arith.addf %57, %58 : vector<16x32xf32>
    %c0_31 = arith.constant 0 : index
    %c0_32 = arith.constant 0 : index
    %c0_33 = arith.constant 0 : index
    %60 = vector.load %arg7[%c0_31, %c0_32, %c0_33] : memref<2x32x32xf32, #tpu.memory_space<vmem>>, vector<1x32x32xf32>
    %61 = vector.shape_cast %60 : vector<1x32x32xf32> to vector<32x32xf32>
    %cst_34 = arith.constant dense<0.000000e+00> : vector<16x32xf32>
    %62 = tpu.matmul %59, %61, %cst_34 {dimension_numbers = #tpu.dot_dimension_numbers<[1], [0], [0], [1], [0, 0, 1, 1], [], []>} : vector<16x32xf32>, vector<32x32xf32>, vector<16x32xf32> -> vector<16x32xf32>
    %c0_35 = arith.constant 0 : index
    %c0_36 = arith.constant 0 : index
    %c0_37 = arith.constant 0 : index
    %63 = vector.load %arg8[%c0_35, %c0_36, %c0_37] : memref<2x1x32xf32, #tpu.memory_space<vmem>>, vector<1x1x32xf32>
    %64 = vector.shape_cast %63 : vector<1x1x32xf32> to vector<1x32xf32>
    %65 = vector.broadcast %64 : vector<1x32xf32> to vector<16x32xf32>
    %66 = arith.addf %62, %65 : vector<16x32xf32>
    %c0_38 = arith.constant 0 : index
    %c0_39 = arith.constant 0 : index
    %c0_40 = arith.constant 0 : index
    %67 = vector.load %arg9[%c0_38, %c0_39, %c0_40] : memref<2x32x32xf32, #tpu.memory_space<vmem>>, vector<1x32x32xf32>
    %68 = vector.shape_cast %67 : vector<1x32x32xf32> to vector<32x32xf32>
    %cst_41 = arith.constant dense<0.000000e+00> : vector<16x32xf32>
    %69 = tpu.matmul %59, %68, %cst_41 {dimension_numbers = #tpu.dot_dimension_numbers<[1], [0], [0], [1], [0, 0, 1, 1], [], []>} : vector<16x32xf32>, vector<32x32xf32>, vector<16x32xf32> -> vector<16x32xf32>
    %c0_42 = arith.constant 0 : index
    %c0_43 = arith.constant 0 : index
    %c0_44 = arith.constant 0 : index
    %70 = vector.load %arg10[%c0_42, %c0_43, %c0_44] : memref<2x1x32xf32, #tpu.memory_space<vmem>>, vector<1x1x32xf32>
    %71 = vector.shape_cast %70 : vector<1x1x32xf32> to vector<1x32xf32>
    %72 = vector.broadcast %71 : vector<1x32xf32> to vector<16x32xf32>
    %73 = arith.addf %69, %72 : vector<16x32xf32>
    %c0_45 = arith.constant 0 : index
    %c0_46 = arith.constant 0 : index
    %c0_47 = arith.constant 0 : index
    %74 = vector.load %arg11[%c0_45, %c0_46, %c0_47] : memref<2x32x32xf32, #tpu.memory_space<vmem>>, vector<1x32x32xf32>
    %75 = vector.shape_cast %74 : vector<1x32x32xf32> to vector<32x32xf32>
    %cst_48 = arith.constant dense<0.000000e+00> : vector<16x32xf32>
    %76 = tpu.matmul %59, %75, %cst_48 {dimension_numbers = #tpu.dot_dimension_numbers<[1], [0], [0], [1], [0, 0, 1, 1], [], []>} : vector<16x32xf32>, vector<32x32xf32>, vector<16x32xf32> -> vector<16x32xf32>
    %c0_49 = arith.constant 0 : index
    %c0_50 = arith.constant 0 : index
    %c0_51 = arith.constant 0 : index
    %77 = vector.load %arg12[%c0_49, %c0_50, %c0_51] : memref<2x1x32xf32, #tpu.memory_space<vmem>>, vector<1x1x32xf32>
    %78 = vector.shape_cast %77 : vector<1x1x32xf32> to vector<1x32xf32>
    %79 = vector.broadcast %78 : vector<1x32xf32> to vector<16x32xf32>
    %80 = arith.addf %76, %79 : vector<16x32xf32>
    %81 = vector.broadcast %2 : vector<1x32xf32> to vector<16x32xf32>
    %82 = arith.mulf %66, %81 : vector<16x32xf32>
    %cst_52 = arith.constant dense<0.000000e+00> : vector<16x16xf32>
    %83 = tpu.matmul %82, %73, %cst_52 {dimension_numbers = #tpu.dot_dimension_numbers<[1], [1], [0], [0], [0, 0, 1, 0], [], []>} : vector<16x32xf32>, vector<16x32xf32>, vector<16x16xf32> -> vector<16x16xf32>
    %84 = arith.addf %83, %0 : vector<16x16xf32>
    %cst_53 = arith.constant dense<0xFF800000> : vector<16xf32>
    %85 = vector.multi_reduction <maximumf>, %84, %cst_53 [1] : vector<16x16xf32> to vector<16xf32>
    %86 = vector.shape_cast %85 : vector<16xf32> to vector<16x1xf32>
    %87 = vector.broadcast %86 : vector<16x1xf32> to vector<16x16xf32>
    %88 = arith.subf %84, %87 : vector<16x16xf32>
    %89 = math.exp %88 : vector<16x16xf32>
    %cst_54 = arith.constant dense<0.000000e+00> : vector<16xf32>
    %90 = vector.multi_reduction <add>, %89, %cst_54 [1] : vector<16x16xf32> to vector<16xf32>
    %91 = vector.shape_cast %90 : vector<16xf32> to vector<16x1xf32>
    %92 = tpu.reciprocal %91 {approx = true} : vector<16x1xf32> -> vector<16x1xf32>
    %93 = vector.broadcast %92 : vector<16x1xf32> to vector<16x16xf32>
    %94 = arith.mulf %89, %93 : vector<16x16xf32>
    %cst_55 = arith.constant dense<0.000000e+00> : vector<16x32xf32>
    %95 = tpu.matmul %94, %80, %cst_55 {dimension_numbers = #tpu.dot_dimension_numbers<[1], [0], [0], [1], [0, 0, 1, 1], [], []>} : vector<16x16xf32>, vector<16x32xf32>, vector<16x32xf32> -> vector<16x32xf32>
    %96 = vector.broadcast %2 : vector<1x32xf32> to vector<16x32xf32>
    %97 = arith.mulf %95, %96 : vector<16x32xf32>
    %98 = vector.broadcast %4 : vector<1x32xf32> to vector<16x32xf32>
    %99 = arith.mulf %66, %98 : vector<16x32xf32>
    %cst_56 = arith.constant dense<0.000000e+00> : vector<16x16xf32>
    %100 = tpu.matmul %99, %73, %cst_56 {dimension_numbers = #tpu.dot_dimension_numbers<[1], [1], [0], [0], [0, 0, 1, 0], [], []>} : vector<16x32xf32>, vector<16x32xf32>, vector<16x16xf32> -> vector<16x16xf32>
    %101 = arith.addf %100, %0 : vector<16x16xf32>
    %cst_57 = arith.constant dense<0xFF800000> : vector<16xf32>
    %102 = vector.multi_reduction <maximumf>, %101, %cst_57 [1] : vector<16x16xf32> to vector<16xf32>
    %103 = vector.shape_cast %102 : vector<16xf32> to vector<16x1xf32>
    %104 = vector.broadcast %103 : vector<16x1xf32> to vector<16x16xf32>
    %105 = arith.subf %101, %104 : vector<16x16xf32>
    %106 = math.exp %105 : vector<16x16xf32>
    %cst_58 = arith.constant dense<0.000000e+00> : vector<16xf32>
    %107 = vector.multi_reduction <add>, %106, %cst_58 [1] : vector<16x16xf32> to vector<16xf32>
    %108 = vector.shape_cast %107 : vector<16xf32> to vector<16x1xf32>
    %109 = tpu.reciprocal %108 {approx = true} : vector<16x1xf32> -> vector<16x1xf32>
    %110 = vector.broadcast %109 : vector<16x1xf32> to vector<16x16xf32>
    %111 = arith.mulf %106, %110 : vector<16x16xf32>
    %cst_59 = arith.constant dense<0.000000e+00> : vector<16x32xf32>
    %112 = tpu.matmul %111, %80, %cst_59 {dimension_numbers = #tpu.dot_dimension_numbers<[1], [0], [0], [1], [0, 0, 1, 1], [], []>} : vector<16x16xf32>, vector<16x32xf32>, vector<16x32xf32> -> vector<16x32xf32>
    %113 = vector.broadcast %4 : vector<1x32xf32> to vector<16x32xf32>
    %114 = arith.mulf %112, %113 : vector<16x32xf32>
    %115 = arith.addf %97, %114 : vector<16x32xf32>
    %116 = vector.broadcast %6 : vector<1x32xf32> to vector<16x32xf32>
    %117 = arith.mulf %66, %116 : vector<16x32xf32>
    %cst_60 = arith.constant dense<0.000000e+00> : vector<16x16xf32>
    %118 = tpu.matmul %117, %73, %cst_60 {dimension_numbers = #tpu.dot_dimension_numbers<[1], [1], [0], [0], [0, 0, 1, 0], [], []>} : vector<16x32xf32>, vector<16x32xf32>, vector<16x16xf32> -> vector<16x16xf32>
    %119 = arith.addf %118, %0 : vector<16x16xf32>
    %cst_61 = arith.constant dense<0xFF800000> : vector<16xf32>
    %120 = vector.multi_reduction <maximumf>, %119, %cst_61 [1] : vector<16x16xf32> to vector<16xf32>
    %121 = vector.shape_cast %120 : vector<16xf32> to vector<16x1xf32>
    %122 = vector.broadcast %121 : vector<16x1xf32> to vector<16x16xf32>
    %123 = arith.subf %119, %122 : vector<16x16xf32>
    %124 = math.exp %123 : vector<16x16xf32>
    %cst_62 = arith.constant dense<0.000000e+00> : vector<16xf32>
    %125 = vector.multi_reduction <add>, %124, %cst_62 [1] : vector<16x16xf32> to vector<16xf32>
    %126 = vector.shape_cast %125 : vector<16xf32> to vector<16x1xf32>
    %127 = tpu.reciprocal %126 {approx = true} : vector<16x1xf32> -> vector<16x1xf32>
    %128 = vector.broadcast %127 : vector<16x1xf32> to vector<16x16xf32>
    %129 = arith.mulf %124, %128 : vector<16x16xf32>
    %cst_63 = arith.constant dense<0.000000e+00> : vector<16x32xf32>
    %130 = tpu.matmul %129, %80, %cst_63 {dimension_numbers = #tpu.dot_dimension_numbers<[1], [0], [0], [1], [0, 0, 1, 1], [], []>} : vector<16x16xf32>, vector<16x32xf32>, vector<16x32xf32> -> vector<16x32xf32>
    %131 = vector.broadcast %6 : vector<1x32xf32> to vector<16x32xf32>
    %132 = arith.mulf %130, %131 : vector<16x32xf32>
    %133 = arith.addf %115, %132 : vector<16x32xf32>
    %134 = vector.broadcast %8 : vector<1x32xf32> to vector<16x32xf32>
    %135 = arith.mulf %66, %134 : vector<16x32xf32>
    %cst_64 = arith.constant dense<0.000000e+00> : vector<16x16xf32>
    %136 = tpu.matmul %135, %73, %cst_64 {dimension_numbers = #tpu.dot_dimension_numbers<[1], [1], [0], [0], [0, 0, 1, 0], [], []>} : vector<16x32xf32>, vector<16x32xf32>, vector<16x16xf32> -> vector<16x16xf32>
    %137 = arith.addf %136, %0 : vector<16x16xf32>
    %cst_65 = arith.constant dense<0xFF800000> : vector<16xf32>
    %138 = vector.multi_reduction <maximumf>, %137, %cst_65 [1] : vector<16x16xf32> to vector<16xf32>
    %139 = vector.shape_cast %138 : vector<16xf32> to vector<16x1xf32>
    %140 = vector.broadcast %139 : vector<16x1xf32> to vector<16x16xf32>
    %141 = arith.subf %137, %140 : vector<16x16xf32>
    %142 = math.exp %141 : vector<16x16xf32>
    %cst_66 = arith.constant dense<0.000000e+00> : vector<16xf32>
    %143 = vector.multi_reduction <add>, %142, %cst_66 [1] : vector<16x16xf32> to vector<16xf32>
    %144 = vector.shape_cast %143 : vector<16xf32> to vector<16x1xf32>
    %145 = tpu.reciprocal %144 {approx = true} : vector<16x1xf32> -> vector<16x1xf32>
    %146 = vector.broadcast %145 : vector<16x1xf32> to vector<16x16xf32>
    %147 = arith.mulf %142, %146 : vector<16x16xf32>
    %cst_67 = arith.constant dense<0.000000e+00> : vector<16x32xf32>
    %148 = tpu.matmul %147, %80, %cst_67 {dimension_numbers = #tpu.dot_dimension_numbers<[1], [0], [0], [1], [0, 0, 1, 1], [], []>} : vector<16x16xf32>, vector<16x32xf32>, vector<16x32xf32> -> vector<16x32xf32>
    %149 = vector.broadcast %8 : vector<1x32xf32> to vector<16x32xf32>
    %150 = arith.mulf %148, %149 : vector<16x32xf32>
    %151 = arith.addf %133, %150 : vector<16x32xf32>
    %c0_68 = arith.constant 0 : index
    %c0_69 = arith.constant 0 : index
    %c0_70 = arith.constant 0 : index
    %152 = vector.load %arg13[%c0_68, %c0_69, %c0_70] : memref<2x32x32xf32, #tpu.memory_space<vmem>>, vector<1x32x32xf32>
    %153 = vector.shape_cast %152 : vector<1x32x32xf32> to vector<32x32xf32>
    %cst_71 = arith.constant dense<0.000000e+00> : vector<16x32xf32>
    %154 = tpu.matmul %151, %153, %cst_71 {dimension_numbers = #tpu.dot_dimension_numbers<[1], [0], [0], [1], [0, 0, 1, 1], [], []>} : vector<16x32xf32>, vector<32x32xf32>, vector<16x32xf32> -> vector<16x32xf32>
    %c0_72 = arith.constant 0 : index
    %c0_73 = arith.constant 0 : index
    %c0_74 = arith.constant 0 : index
    %155 = vector.load %arg14[%c0_72, %c0_73, %c0_74] : memref<2x1x32xf32, #tpu.memory_space<vmem>>, vector<1x1x32xf32>
    %156 = vector.shape_cast %155 : vector<1x1x32xf32> to vector<1x32xf32>
    %157 = vector.broadcast %156 : vector<1x32xf32> to vector<16x32xf32>
    %158 = arith.addf %154, %157 : vector<16x32xf32>
    %159 = arith.addf %33, %158 : vector<16x32xf32>
    %c0_75 = arith.constant 0 : index
    %c0_76 = arith.constant 0 : index
    %c0_77 = arith.constant 0 : index
    %160 = vector.load %arg15[%c0_75, %c0_76, %c0_77] : memref<2x1x32xf32, #tpu.memory_space<vmem>>, vector<1x1x32xf32>
    %161 = vector.shape_cast %160 : vector<1x1x32xf32> to vector<1x32xf32>
    %c0_78 = arith.constant 0 : index
    %c0_79 = arith.constant 0 : index
    %c0_80 = arith.constant 0 : index
    %162 = vector.load %arg16[%c0_78, %c0_79, %c0_80] : memref<2x1x32xf32, #tpu.memory_space<vmem>>, vector<1x1x32xf32>
    %163 = vector.shape_cast %162 : vector<1x1x32xf32> to vector<1x32xf32>
    %cst_81 = arith.constant dense<0.000000e+00> : vector<16xf32>
    %164 = vector.multi_reduction <add>, %159, %cst_81 [1] : vector<16x32xf32> to vector<16xf32>
    %165 = vector.shape_cast %164 : vector<16xf32> to vector<16x1xf32>
    %cst_82 = arith.constant 3.200000e+01 : f32
    %166 = vector.broadcast %cst_82 : f32 to vector<16x1xf32>
    %167 = arith.divf %165, %166 : vector<16x1xf32>
    %168 = vector.broadcast %167 : vector<16x1xf32> to vector<16x32xf32>
    %169 = arith.subf %159, %168 : vector<16x32xf32>
    %170 = arith.mulf %169, %169 : vector<16x32xf32>
    %cst_83 = arith.constant dense<0.000000e+00> : vector<16xf32>
    %171 = vector.multi_reduction <add>, %170, %cst_83 [1] : vector<16x32xf32> to vector<16xf32>
    %172 = vector.shape_cast %171 : vector<16xf32> to vector<16x1xf32>
    %cst_84 = arith.constant 3.200000e+01 : f32
    %173 = vector.broadcast %cst_84 : f32 to vector<16x1xf32>
    %174 = arith.divf %172, %173 : vector<16x1xf32>
    %175 = vector.broadcast %167 : vector<16x1xf32> to vector<16x32xf32>
    %176 = arith.subf %159, %175 : vector<16x32xf32>
    %cst_85 = arith.constant 9.99999974E-6 : f32
    %177 = vector.broadcast %cst_85 : f32 to vector<16x1xf32>
    %178 = arith.addf %174, %177 : vector<16x1xf32>
    %179 = math.rsqrt %178 : vector<16x1xf32>
    %180 = vector.broadcast %179 : vector<16x1xf32> to vector<16x32xf32>
    %181 = arith.mulf %176, %180 : vector<16x32xf32>
    %182 = vector.broadcast %161 : vector<1x32xf32> to vector<16x32xf32>
    %183 = arith.mulf %181, %182 : vector<16x32xf32>
    %184 = vector.broadcast %163 : vector<1x32xf32> to vector<16x32xf32>
    %185 = arith.addf %183, %184 : vector<16x32xf32>
    %c0_86 = arith.constant 0 : index
    %c0_87 = arith.constant 0 : index
    %c0_88 = arith.constant 0 : index
    %186 = vector.load %arg17[%c0_86, %c0_87, %c0_88] : memref<2x32x64xf32, #tpu.memory_space<vmem>>, vector<1x32x64xf32>
    %187 = vector.shape_cast %186 : vector<1x32x64xf32> to vector<32x64xf32>
    %cst_89 = arith.constant dense<0.000000e+00> : vector<16x64xf32>
    %188 = tpu.matmul %185, %187, %cst_89 {dimension_numbers = #tpu.dot_dimension_numbers<[1], [0], [0], [1], [0, 0, 1, 1], [], []>} : vector<16x32xf32>, vector<32x64xf32>, vector<16x64xf32> -> vector<16x64xf32>
    %c0_90 = arith.constant 0 : index
    %c0_91 = arith.constant 0 : index
    %c0_92 = arith.constant 0 : index
    %189 = vector.load %arg18[%c0_90, %c0_91, %c0_92] : memref<2x1x64xf32, #tpu.memory_space<vmem>>, vector<1x1x64xf32>
    %190 = vector.shape_cast %189 : vector<1x1x64xf32> to vector<1x64xf32>
    %191 = vector.broadcast %190 : vector<1x64xf32> to vector<16x64xf32>
    %192 = arith.addf %188, %191 : vector<16x64xf32>
    %cst_93 = arith.constant 5.000000e-01 : f32
    %193 = vector.broadcast %cst_93 : f32 to vector<16x64xf32>
    %194 = arith.mulf %193, %192 : vector<16x64xf32>
    %cst_94 = arith.constant 2.000000e+00 : f32
    %195 = math.sqrt %cst_94 : f32
    %196 = vector.broadcast %195 : f32 to vector<16x64xf32>
    %197 = arith.divf %192, %196 : vector<16x64xf32>
    %198 = math.erf %197 : vector<16x64xf32>
    %cst_95 = arith.constant 1.000000e+00 : f32
    %199 = vector.broadcast %cst_95 : f32 to vector<16x64xf32>
    %200 = arith.addf %199, %198 : vector<16x64xf32>
    %201 = arith.mulf %194, %200 : vector<16x64xf32>
    %c0_96 = arith.constant 0 : index
    %c0_97 = arith.constant 0 : index
    %c0_98 = arith.constant 0 : index
    %202 = vector.load %arg19[%c0_96, %c0_97, %c0_98] : memref<2x64x32xf32, #tpu.memory_space<vmem>>, vector<1x64x32xf32>
    %203 = vector.shape_cast %202 : vector<1x64x32xf32> to vector<64x32xf32>
    %cst_99 = arith.constant dense<0.000000e+00> : vector<16x32xf32>
    %204 = tpu.matmul %201, %203, %cst_99 {dimension_numbers = #tpu.dot_dimension_numbers<[1], [0], [0], [1], [0, 0, 1, 1], [], []>} : vector<16x64xf32>, vector<64x32xf32>, vector<16x32xf32> -> vector<16x32xf32>
    %c0_100 = arith.constant 0 : index
    %c0_101 = arith.constant 0 : index
    %c0_102 = arith.constant 0 : index
    %205 = vector.load %arg20[%c0_100, %c0_101, %c0_102] : memref<2x1x32xf32, #tpu.memory_space<vmem>>, vector<1x1x32xf32>
    %206 = vector.shape_cast %205 : vector<1x1x32xf32> to vector<1x32xf32>
    %207 = vector.broadcast %206 : vector<1x32xf32> to vector<16x32xf32>
    %208 = arith.addf %204, %207 : vector<16x32xf32>
    %209 = arith.addf %159, %208 : vector<16x32xf32>
    %c1_103 = arith.constant 1 : index
    %c0_104 = arith.constant 0 : index
    %c0_105 = arith.constant 0 : index
    %210 = vector.load %arg5[%c1_103, %c0_104, %c0_105] : memref<2x1x32xf32, #tpu.memory_space<vmem>>, vector<1x1x32xf32>
    %211 = vector.shape_cast %210 : vector<1x1x32xf32> to vector<1x32xf32>
    %c1_106 = arith.constant 1 : index
    %c0_107 = arith.constant 0 : index
    %c0_108 = arith.constant 0 : index
    %212 = vector.load %arg6[%c1_106, %c0_107, %c0_108] : memref<2x1x32xf32, #tpu.memory_space<vmem>>, vector<1x1x32xf32>
    %213 = vector.shape_cast %212 : vector<1x1x32xf32> to vector<1x32xf32>
    %cst_109 = arith.constant dense<0.000000e+00> : vector<16xf32>
    %214 = vector.multi_reduction <add>, %209, %cst_109 [1] : vector<16x32xf32> to vector<16xf32>
    %215 = vector.shape_cast %214 : vector<16xf32> to vector<16x1xf32>
    %cst_110 = arith.constant 3.200000e+01 : f32
    %216 = vector.broadcast %cst_110 : f32 to vector<16x1xf32>
    %217 = arith.divf %215, %216 : vector<16x1xf32>
    %218 = vector.broadcast %217 : vector<16x1xf32> to vector<16x32xf32>
    %219 = arith.subf %209, %218 : vector<16x32xf32>
    %220 = arith.mulf %219, %219 : vector<16x32xf32>
    %cst_111 = arith.constant dense<0.000000e+00> : vector<16xf32>
    %221 = vector.multi_reduction <add>, %220, %cst_111 [1] : vector<16x32xf32> to vector<16xf32>
    %222 = vector.shape_cast %221 : vector<16xf32> to vector<16x1xf32>
    %cst_112 = arith.constant 3.200000e+01 : f32
    %223 = vector.broadcast %cst_112 : f32 to vector<16x1xf32>
    %224 = arith.divf %222, %223 : vector<16x1xf32>
    %225 = vector.broadcast %217 : vector<16x1xf32> to vector<16x32xf32>
    %226 = arith.subf %209, %225 : vector<16x32xf32>
    %cst_113 = arith.constant 9.99999974E-6 : f32
    %227 = vector.broadcast %cst_113 : f32 to vector<16x1xf32>
    %228 = arith.addf %224, %227 : vector<16x1xf32>
    %229 = math.rsqrt %228 : vector<16x1xf32>
    %230 = vector.broadcast %229 : vector<16x1xf32> to vector<16x32xf32>
    %231 = arith.mulf %226, %230 : vector<16x32xf32>
    %232 = vector.broadcast %211 : vector<1x32xf32> to vector<16x32xf32>
    %233 = arith.mulf %231, %232 : vector<16x32xf32>
    %234 = vector.broadcast %213 : vector<1x32xf32> to vector<16x32xf32>
    %235 = arith.addf %233, %234 : vector<16x32xf32>
    %c1_114 = arith.constant 1 : index
    %c0_115 = arith.constant 0 : index
    %c0_116 = arith.constant 0 : index
    %236 = vector.load %arg7[%c1_114, %c0_115, %c0_116] : memref<2x32x32xf32, #tpu.memory_space<vmem>>, vector<1x32x32xf32>
    %237 = vector.shape_cast %236 : vector<1x32x32xf32> to vector<32x32xf32>
    %cst_117 = arith.constant dense<0.000000e+00> : vector<16x32xf32>
    %238 = tpu.matmul %235, %237, %cst_117 {dimension_numbers = #tpu.dot_dimension_numbers<[1], [0], [0], [1], [0, 0, 1, 1], [], []>} : vector<16x32xf32>, vector<32x32xf32>, vector<16x32xf32> -> vector<16x32xf32>
    %c1_118 = arith.constant 1 : index
    %c0_119 = arith.constant 0 : index
    %c0_120 = arith.constant 0 : index
    %239 = vector.load %arg8[%c1_118, %c0_119, %c0_120] : memref<2x1x32xf32, #tpu.memory_space<vmem>>, vector<1x1x32xf32>
    %240 = vector.shape_cast %239 : vector<1x1x32xf32> to vector<1x32xf32>
    %241 = vector.broadcast %240 : vector<1x32xf32> to vector<16x32xf32>
    %242 = arith.addf %238, %241 : vector<16x32xf32>
    %c1_121 = arith.constant 1 : index
    %c0_122 = arith.constant 0 : index
    %c0_123 = arith.constant 0 : index
    %243 = vector.load %arg9[%c1_121, %c0_122, %c0_123] : memref<2x32x32xf32, #tpu.memory_space<vmem>>, vector<1x32x32xf32>
    %244 = vector.shape_cast %243 : vector<1x32x32xf32> to vector<32x32xf32>
    %cst_124 = arith.constant dense<0.000000e+00> : vector<16x32xf32>
    %245 = tpu.matmul %235, %244, %cst_124 {dimension_numbers = #tpu.dot_dimension_numbers<[1], [0], [0], [1], [0, 0, 1, 1], [], []>} : vector<16x32xf32>, vector<32x32xf32>, vector<16x32xf32> -> vector<16x32xf32>
    %c1_125 = arith.constant 1 : index
    %c0_126 = arith.constant 0 : index
    %c0_127 = arith.constant 0 : index
    %246 = vector.load %arg10[%c1_125, %c0_126, %c0_127] : memref<2x1x32xf32, #tpu.memory_space<vmem>>, vector<1x1x32xf32>
    %247 = vector.shape_cast %246 : vector<1x1x32xf32> to vector<1x32xf32>
    %248 = vector.broadcast %247 : vector<1x32xf32> to vector<16x32xf32>
    %249 = arith.addf %245, %248 : vector<16x32xf32>
    %c1_128 = arith.constant 1 : index
    %c0_129 = arith.constant 0 : index
    %c0_130 = arith.constant 0 : index
    %250 = vector.load %arg11[%c1_128, %c0_129, %c0_130] : memref<2x32x32xf32, #tpu.memory_space<vmem>>, vector<1x32x32xf32>
    %251 = vector.shape_cast %250 : vector<1x32x32xf32> to vector<32x32xf32>
    %cst_131 = arith.constant dense<0.000000e+00> : vector<16x32xf32>
    %252 = tpu.matmul %235, %251, %cst_131 {dimension_numbers = #tpu.dot_dimension_numbers<[1], [0], [0], [1], [0, 0, 1, 1], [], []>} : vector<16x32xf32>, vector<32x32xf32>, vector<16x32xf32> -> vector<16x32xf32>
    %c1_132 = arith.constant 1 : index
    %c0_133 = arith.constant 0 : index
    %c0_134 = arith.constant 0 : index
    %253 = vector.load %arg12[%c1_132, %c0_133, %c0_134] : memref<2x1x32xf32, #tpu.memory_space<vmem>>, vector<1x1x32xf32>
    %254 = vector.shape_cast %253 : vector<1x1x32xf32> to vector<1x32xf32>
    %255 = vector.broadcast %254 : vector<1x32xf32> to vector<16x32xf32>
    %256 = arith.addf %252, %255 : vector<16x32xf32>
    %257 = vector.broadcast %2 : vector<1x32xf32> to vector<16x32xf32>
    %258 = arith.mulf %242, %257 : vector<16x32xf32>
    %cst_135 = arith.constant dense<0.000000e+00> : vector<16x16xf32>
    %259 = tpu.matmul %258, %249, %cst_135 {dimension_numbers = #tpu.dot_dimension_numbers<[1], [1], [0], [0], [0, 0, 1, 0], [], []>} : vector<16x32xf32>, vector<16x32xf32>, vector<16x16xf32> -> vector<16x16xf32>
    %260 = arith.addf %259, %0 : vector<16x16xf32>
    %cst_136 = arith.constant dense<0xFF800000> : vector<16xf32>
    %261 = vector.multi_reduction <maximumf>, %260, %cst_136 [1] : vector<16x16xf32> to vector<16xf32>
    %262 = vector.shape_cast %261 : vector<16xf32> to vector<16x1xf32>
    %263 = vector.broadcast %262 : vector<16x1xf32> to vector<16x16xf32>
    %264 = arith.subf %260, %263 : vector<16x16xf32>
    %265 = math.exp %264 : vector<16x16xf32>
    %cst_137 = arith.constant dense<0.000000e+00> : vector<16xf32>
    %266 = vector.multi_reduction <add>, %265, %cst_137 [1] : vector<16x16xf32> to vector<16xf32>
    %267 = vector.shape_cast %266 : vector<16xf32> to vector<16x1xf32>
    %268 = tpu.reciprocal %267 {approx = true} : vector<16x1xf32> -> vector<16x1xf32>
    %269 = vector.broadcast %268 : vector<16x1xf32> to vector<16x16xf32>
    %270 = arith.mulf %265, %269 : vector<16x16xf32>
    %cst_138 = arith.constant dense<0.000000e+00> : vector<16x32xf32>
    %271 = tpu.matmul %270, %256, %cst_138 {dimension_numbers = #tpu.dot_dimension_numbers<[1], [0], [0], [1], [0, 0, 1, 1], [], []>} : vector<16x16xf32>, vector<16x32xf32>, vector<16x32xf32> -> vector<16x32xf32>
    %272 = vector.broadcast %2 : vector<1x32xf32> to vector<16x32xf32>
    %273 = arith.mulf %271, %272 : vector<16x32xf32>
    %274 = vector.broadcast %4 : vector<1x32xf32> to vector<16x32xf32>
    %275 = arith.mulf %242, %274 : vector<16x32xf32>
    %cst_139 = arith.constant dense<0.000000e+00> : vector<16x16xf32>
    %276 = tpu.matmul %275, %249, %cst_139 {dimension_numbers = #tpu.dot_dimension_numbers<[1], [1], [0], [0], [0, 0, 1, 0], [], []>} : vector<16x32xf32>, vector<16x32xf32>, vector<16x16xf32> -> vector<16x16xf32>
    %277 = arith.addf %276, %0 : vector<16x16xf32>
    %cst_140 = arith.constant dense<0xFF800000> : vector<16xf32>
    %278 = vector.multi_reduction <maximumf>, %277, %cst_140 [1] : vector<16x16xf32> to vector<16xf32>
    %279 = vector.shape_cast %278 : vector<16xf32> to vector<16x1xf32>
    %280 = vector.broadcast %279 : vector<16x1xf32> to vector<16x16xf32>
    %281 = arith.subf %277, %280 : vector<16x16xf32>
    %282 = math.exp %281 : vector<16x16xf32>
    %cst_141 = arith.constant dense<0.000000e+00> : vector<16xf32>
    %283 = vector.multi_reduction <add>, %282, %cst_141 [1] : vector<16x16xf32> to vector<16xf32>
    %284 = vector.shape_cast %283 : vector<16xf32> to vector<16x1xf32>
    %285 = tpu.reciprocal %284 {approx = true} : vector<16x1xf32> -> vector<16x1xf32>
    %286 = vector.broadcast %285 : vector<16x1xf32> to vector<16x16xf32>
    %287 = arith.mulf %282, %286 : vector<16x16xf32>
    %cst_142 = arith.constant dense<0.000000e+00> : vector<16x32xf32>
    %288 = tpu.matmul %287, %256, %cst_142 {dimension_numbers = #tpu.dot_dimension_numbers<[1], [0], [0], [1], [0, 0, 1, 1], [], []>} : vector<16x16xf32>, vector<16x32xf32>, vector<16x32xf32> -> vector<16x32xf32>
    %289 = vector.broadcast %4 : vector<1x32xf32> to vector<16x32xf32>
    %290 = arith.mulf %288, %289 : vector<16x32xf32>
    %291 = arith.addf %273, %290 : vector<16x32xf32>
    %292 = vector.broadcast %6 : vector<1x32xf32> to vector<16x32xf32>
    %293 = arith.mulf %242, %292 : vector<16x32xf32>
    %cst_143 = arith.constant dense<0.000000e+00> : vector<16x16xf32>
    %294 = tpu.matmul %293, %249, %cst_143 {dimension_numbers = #tpu.dot_dimension_numbers<[1], [1], [0], [0], [0, 0, 1, 0], [], []>} : vector<16x32xf32>, vector<16x32xf32>, vector<16x16xf32> -> vector<16x16xf32>
    %295 = arith.addf %294, %0 : vector<16x16xf32>
    %cst_144 = arith.constant dense<0xFF800000> : vector<16xf32>
    %296 = vector.multi_reduction <maximumf>, %295, %cst_144 [1] : vector<16x16xf32> to vector<16xf32>
    %297 = vector.shape_cast %296 : vector<16xf32> to vector<16x1xf32>
    %298 = vector.broadcast %297 : vector<16x1xf32> to vector<16x16xf32>
    %299 = arith.subf %295, %298 : vector<16x16xf32>
    %300 = math.exp %299 : vector<16x16xf32>
    %cst_145 = arith.constant dense<0.000000e+00> : vector<16xf32>
    %301 = vector.multi_reduction <add>, %300, %cst_145 [1] : vector<16x16xf32> to vector<16xf32>
    %302 = vector.shape_cast %301 : vector<16xf32> to vector<16x1xf32>
    %303 = tpu.reciprocal %302 {approx = true} : vector<16x1xf32> -> vector<16x1xf32>
    %304 = vector.broadcast %303 : vector<16x1xf32> to vector<16x16xf32>
    %305 = arith.mulf %300, %304 : vector<16x16xf32>
    %cst_146 = arith.constant dense<0.000000e+00> : vector<16x32xf32>
    %306 = tpu.matmul %305, %256, %cst_146 {dimension_numbers = #tpu.dot_dimension_numbers<[1], [0], [0], [1], [0, 0, 1, 1], [], []>} : vector<16x16xf32>, vector<16x32xf32>, vector<16x32xf32> -> vector<16x32xf32>
    %307 = vector.broadcast %6 : vector<1x32xf32> to vector<16x32xf32>
    %308 = arith.mulf %306, %307 : vector<16x32xf32>
    %309 = arith.addf %291, %308 : vector<16x32xf32>
    %310 = vector.broadcast %8 : vector<1x32xf32> to vector<16x32xf32>
    %311 = arith.mulf %242, %310 : vector<16x32xf32>
    %cst_147 = arith.constant dense<0.000000e+00> : vector<16x16xf32>
    %312 = tpu.matmul %311, %249, %cst_147 {dimension_numbers = #tpu.dot_dimension_numbers<[1], [1], [0], [0], [0, 0, 1, 0], [], []>} : vector<16x32xf32>, vector<16x32xf32>, vector<16x16xf32> -> vector<16x16xf32>
    %313 = arith.addf %312, %0 : vector<16x16xf32>
    %cst_148 = arith.constant dense<0xFF800000> : vector<16xf32>
    %314 = vector.multi_reduction <maximumf>, %313, %cst_148 [1] : vector<16x16xf32> to vector<16xf32>
    %315 = vector.shape_cast %314 : vector<16xf32> to vector<16x1xf32>
    %316 = vector.broadcast %315 : vector<16x1xf32> to vector<16x16xf32>
    %317 = arith.subf %313, %316 : vector<16x16xf32>
    %318 = math.exp %317 : vector<16x16xf32>
    %cst_149 = arith.constant dense<0.000000e+00> : vector<16xf32>
    %319 = vector.multi_reduction <add>, %318, %cst_149 [1] : vector<16x16xf32> to vector<16xf32>
    %320 = vector.shape_cast %319 : vector<16xf32> to vector<16x1xf32>
    %321 = tpu.reciprocal %320 {approx = true} : vector<16x1xf32> -> vector<16x1xf32>
    %322 = vector.broadcast %321 : vector<16x1xf32> to vector<16x16xf32>
    %323 = arith.mulf %318, %322 : vector<16x16xf32>
    %cst_150 = arith.constant dense<0.000000e+00> : vector<16x32xf32>
    %324 = tpu.matmul %323, %256, %cst_150 {dimension_numbers = #tpu.dot_dimension_numbers<[1], [0], [0], [1], [0, 0, 1, 1], [], []>} : vector<16x16xf32>, vector<16x32xf32>, vector<16x32xf32> -> vector<16x32xf32>
    %325 = vector.broadcast %8 : vector<1x32xf32> to vector<16x32xf32>
    %326 = arith.mulf %324, %325 : vector<16x32xf32>
    %327 = arith.addf %309, %326 : vector<16x32xf32>
    %c1_151 = arith.constant 1 : index
    %c0_152 = arith.constant 0 : index
    %c0_153 = arith.constant 0 : index
    %328 = vector.load %arg13[%c1_151, %c0_152, %c0_153] : memref<2x32x32xf32, #tpu.memory_space<vmem>>, vector<1x32x32xf32>
    %329 = vector.shape_cast %328 : vector<1x32x32xf32> to vector<32x32xf32>
    %cst_154 = arith.constant dense<0.000000e+00> : vector<16x32xf32>
    %330 = tpu.matmul %327, %329, %cst_154 {dimension_numbers = #tpu.dot_dimension_numbers<[1], [0], [0], [1], [0, 0, 1, 1], [], []>} : vector<16x32xf32>, vector<32x32xf32>, vector<16x32xf32> -> vector<16x32xf32>
    %c1_155 = arith.constant 1 : index
    %c0_156 = arith.constant 0 : index
    %c0_157 = arith.constant 0 : index
    %331 = vector.load %arg14[%c1_155, %c0_156, %c0_157] : memref<2x1x32xf32, #tpu.memory_space<vmem>>, vector<1x1x32xf32>
    %332 = vector.shape_cast %331 : vector<1x1x32xf32> to vector<1x32xf32>
    %333 = vector.broadcast %332 : vector<1x32xf32> to vector<16x32xf32>
    %334 = arith.addf %330, %333 : vector<16x32xf32>
    %335 = arith.addf %209, %334 : vector<16x32xf32>
    %c1_158 = arith.constant 1 : index
    %c0_159 = arith.constant 0 : index
    %c0_160 = arith.constant 0 : index
    %336 = vector.load %arg15[%c1_158, %c0_159, %c0_160] : memref<2x1x32xf32, #tpu.memory_space<vmem>>, vector<1x1x32xf32>
    %337 = vector.shape_cast %336 : vector<1x1x32xf32> to vector<1x32xf32>
    %c1_161 = arith.constant 1 : index
    %c0_162 = arith.constant 0 : index
    %c0_163 = arith.constant 0 : index
    %338 = vector.load %arg16[%c1_161, %c0_162, %c0_163] : memref<2x1x32xf32, #tpu.memory_space<vmem>>, vector<1x1x32xf32>
    %339 = vector.shape_cast %338 : vector<1x1x32xf32> to vector<1x32xf32>
    %cst_164 = arith.constant dense<0.000000e+00> : vector<16xf32>
    %340 = vector.multi_reduction <add>, %335, %cst_164 [1] : vector<16x32xf32> to vector<16xf32>
    %341 = vector.shape_cast %340 : vector<16xf32> to vector<16x1xf32>
    %cst_165 = arith.constant 3.200000e+01 : f32
    %342 = vector.broadcast %cst_165 : f32 to vector<16x1xf32>
    %343 = arith.divf %341, %342 : vector<16x1xf32>
    %344 = vector.broadcast %343 : vector<16x1xf32> to vector<16x32xf32>
    %345 = arith.subf %335, %344 : vector<16x32xf32>
    %346 = arith.mulf %345, %345 : vector<16x32xf32>
    %cst_166 = arith.constant dense<0.000000e+00> : vector<16xf32>
    %347 = vector.multi_reduction <add>, %346, %cst_166 [1] : vector<16x32xf32> to vector<16xf32>
    %348 = vector.shape_cast %347 : vector<16xf32> to vector<16x1xf32>
    %cst_167 = arith.constant 3.200000e+01 : f32
    %349 = vector.broadcast %cst_167 : f32 to vector<16x1xf32>
    %350 = arith.divf %348, %349 : vector<16x1xf32>
    %351 = vector.broadcast %343 : vector<16x1xf32> to vector<16x32xf32>
    %352 = arith.subf %335, %351 : vector<16x32xf32>
    %cst_168 = arith.constant 9.99999974E-6 : f32
    %353 = vector.broadcast %cst_168 : f32 to vector<16x1xf32>
    %354 = arith.addf %350, %353 : vector<16x1xf32>
    %355 = math.rsqrt %354 : vector<16x1xf32>
    %356 = vector.broadcast %355 : vector<16x1xf32> to vector<16x32xf32>
    %357 = arith.mulf %352, %356 : vector<16x32xf32>
    %358 = vector.broadcast %337 : vector<1x32xf32> to vector<16x32xf32>
    %359 = arith.mulf %357, %358 : vector<16x32xf32>
    %360 = vector.broadcast %339 : vector<1x32xf32> to vector<16x32xf32>
    %361 = arith.addf %359, %360 : vector<16x32xf32>
    %c1_169 = arith.constant 1 : index
    %c0_170 = arith.constant 0 : index
    %c0_171 = arith.constant 0 : index
    %362 = vector.load %arg17[%c1_169, %c0_170, %c0_171] : memref<2x32x64xf32, #tpu.memory_space<vmem>>, vector<1x32x64xf32>
    %363 = vector.shape_cast %362 : vector<1x32x64xf32> to vector<32x64xf32>
    %cst_172 = arith.constant dense<0.000000e+00> : vector<16x64xf32>
    %364 = tpu.matmul %361, %363, %cst_172 {dimension_numbers = #tpu.dot_dimension_numbers<[1], [0], [0], [1], [0, 0, 1, 1], [], []>} : vector<16x32xf32>, vector<32x64xf32>, vector<16x64xf32> -> vector<16x64xf32>
    %c1_173 = arith.constant 1 : index
    %c0_174 = arith.constant 0 : index
    %c0_175 = arith.constant 0 : index
    %365 = vector.load %arg18[%c1_173, %c0_174, %c0_175] : memref<2x1x64xf32, #tpu.memory_space<vmem>>, vector<1x1x64xf32>
    %366 = vector.shape_cast %365 : vector<1x1x64xf32> to vector<1x64xf32>
    %367 = vector.broadcast %366 : vector<1x64xf32> to vector<16x64xf32>
    %368 = arith.addf %364, %367 : vector<16x64xf32>
    %cst_176 = arith.constant 5.000000e-01 : f32
    %369 = vector.broadcast %cst_176 : f32 to vector<16x64xf32>
    %370 = arith.mulf %369, %368 : vector<16x64xf32>
    %cst_177 = arith.constant 2.000000e+00 : f32
    %371 = math.sqrt %cst_177 : f32
    %372 = vector.broadcast %371 : f32 to vector<16x64xf32>
    %373 = arith.divf %368, %372 : vector<16x64xf32>
    %374 = math.erf %373 : vector<16x64xf32>
    %cst_178 = arith.constant 1.000000e+00 : f32
    %375 = vector.broadcast %cst_178 : f32 to vector<16x64xf32>
    %376 = arith.addf %375, %374 : vector<16x64xf32>
    %377 = arith.mulf %370, %376 : vector<16x64xf32>
    %c1_179 = arith.constant 1 : index
    %c0_180 = arith.constant 0 : index
    %c0_181 = arith.constant 0 : index
    %378 = vector.load %arg19[%c1_179, %c0_180, %c0_181] : memref<2x64x32xf32, #tpu.memory_space<vmem>>, vector<1x64x32xf32>
    %379 = vector.shape_cast %378 : vector<1x64x32xf32> to vector<64x32xf32>
    %cst_182 = arith.constant dense<0.000000e+00> : vector<16x32xf32>
    %380 = tpu.matmul %377, %379, %cst_182 {dimension_numbers = #tpu.dot_dimension_numbers<[1], [0], [0], [1], [0, 0, 1, 1], [], []>} : vector<16x64xf32>, vector<64x32xf32>, vector<16x32xf32> -> vector<16x32xf32>
    %c1_183 = arith.constant 1 : index
    %c0_184 = arith.constant 0 : index
    %c0_185 = arith.constant 0 : index
    %381 = vector.load %arg20[%c1_183, %c0_184, %c0_185] : memref<2x1x32xf32, #tpu.memory_space<vmem>>, vector<1x1x32xf32>
    %382 = vector.shape_cast %381 : vector<1x1x32xf32> to vector<1x32xf32>
    %383 = vector.broadcast %382 : vector<1x32xf32> to vector<16x32xf32>
    %384 = arith.addf %380, %383 : vector<16x32xf32>
    %385 = arith.addf %335, %384 : vector<16x32xf32>
    %c0_186 = arith.constant 0 : index
    %c0_187 = arith.constant 0 : index
    %386 = vector.load %arg21[%c0_186, %c0_187] : memref<16x32xf32, #tpu.memory_space<vmem>>, vector<16x32xf32>
    tpu.vector_store %arg21[%c0_186, %c0_187], %385 {strides = array<i32>} : memref<16x32xf32, #tpu.memory_space<vmem>>, vector<16x32xf32>,
    return
  }
}

</mosaic_0001>

<bundles_post_ra>
// kernel: transformer_encoder.1
= control target key start
LH: loop header
LB: loop body
LE: loop exit
PB: predicated region body
PF: predicated region fallthrough
CT: control target
= control target key end

     0   :  { %s4562_s0 = inlined_call_operand.vmem [shape: f32[16,32], index: 0, kind: input, shape index: {}]   ;;  %s4563_s1 = inlined_call_operand.vmem [shape: f32[16,16], index: 1, kind: input, shape index: {}]   ;;  %s4564_s2 = inlined_call_operand.vmem [shape: f32[4,1,32], index: 2, kind: input, shape index: {}]   ;;  %s4565_s3 = inlined_call_operand.vmem [shape: f32[1,32], index: 3, kind: input, shape index: {}]   ;;  %s4566_s4 = inlined_call_operand.vmem [shape: f32[1,32], index: 4, kind: input, shape index: {}]   ;;  %s4567_s5 = inlined_call_operand.vmem [shape: f32[2,1,32], index: 5, kind: input, shape index: {}]   ;;  %s4568_s6 = inlined_call_operand.vmem [shape: f32[2,1,32], index: 6, kind: input, shape index: {}]   ;;  %s4569_s7 = inlined_call_operand.vmem [shape: f32[2,32,32], index: 7, kind: input, shape index: {}]   ;;  %s4570_s8 = inlined_call_operand.vmem [shape: f32[2,1,32], index: 8, kind: input, shape index: {}]   ;;  %s4571_s9 = inlined_call_operand.vmem [shape: f32[2,32,32], index: 9, kind: input, shape index: {}]   ;;  %s4572_s10 = inlined_call_operand.vmem [shape: f32[2,1,32], index: 10, kind: input, shape index: {}]   ;;  %s4573_s11 = inlined_call_operand.vmem [shape: f32[2,32,32], index: 11, kind: input, shape index: {}]   ;;  %s4574_s12 = inlined_call_operand.vmem [shape: f32[2,1,32], index: 12, kind: input, shape index: {}]   ;;  %s4575_s13 = inlined_call_operand.vmem [shape: f32[2,32,32], index: 13, kind: input, shape index: {}]   ;;  %s4576_s14 = inlined_call_operand.vmem [shape: f32[2,1,32], index: 14, kind: input, shape index: {}]   ;;  %s4577_s15 = inlined_call_operand.vmem [shape: f32[2,1,32], index: 15, kind: input, shape index: {}]   ;;  %s4578_s16 = inlined_call_operand.vmem [shape: f32[2,1,32], index: 16, kind: input, shape index: {}]   ;;  %s4579_s17 = inlined_call_operand.vmem [shape: f32[2,32,64], index: 17, kind: input, shape index: {}]   ;;  %s4580_s18 = inlined_call_operand.vmem [shape: f32[2,1,64], index: 18, kind: input, shape index: {}]   ;;  %s4581_s19 = inlined_call_operand.vmem [shape: f32[2,64,32], index: 19, kind: input, shape index: {}]   ;;  %s4582_s20 = inlined_call_operand.vmem [shape: f32[2,1,32], index: 20, kind: input, shape index: {}]   ;;  %s4583_s21 = inlined_call_operand.hbm [shape: f32[16,32], index: 21, kind: output, shape index: {}]  }
   0x1   :  { %4588 = sst [smem:[#allocation5_spill]] %s4562_s0 }
   0x2   :  { %4589 = sst [smem:[#allocation6_spill]] %s4563_s1 }
   0x3   :  { %4590 = sst [smem:[#allocation7_spill]] %s4564_s2 }
   0x4   :  { %4591 = sst [smem:[#allocation8_spill]] %s4565_s3 }
   0x5   :  { %4592 = sst [smem:[#allocation9_spill]] %s4566_s4 }
   0x6   :  { %4593 = sst [smem:[#allocation10_spill]] %s4567_s5 }
   0x7   :  { %s4594_s26 = sld [smem:[#allocation5_spill]]  ;;  %vm82_vm0 = vcmask 261120  }
   0xd   :  { %v78_v0 = vld [vmem:[%s4594_s26] sm:$0xff]  ;;  %v79_v1 = vld [vmem:[%s4594_s26 + $0x8] sm:$0xff] }
   0xe   :  { %26 = vsyncpa [#allocation3], 0  ;;  %v83_v2 = vsel %vm82_vm0, %v78_v0, 0.0  ;;  %v86_v3 = vsel %vm82_vm0, %v79_v1, 0.0  ;;  %s4595_s0 = sld [smem:[#allocation8_spill]]  ;;  %s4596_s5 = sld [smem:[#allocation9_spill]] }
   0xf   :  { %84 = vadd.xlane.f32.xlu0 %v83_v2  ;;  %v170_v42 = vld [vmem:[%s4569_s7] sm:$0xff]  ;;  %v171_v43 = vld [vmem:[%s4569_s7 + $0x8] sm:$0xff]  ;;  %v172_v47 = vld [vmem:[%s4569_s7 + $0x10] sm:$0xff]  ;;  %s4597_s27 = sld [smem:[#allocation10_spill]]  ;;  %s4598_s25 = sld [smem:[#allocation7_spill]]  ;;  %vm529_vm2 = vcmask 130048  }
  0x10   :  { %v348_v44 = vld [vmem:[%s4573_s11] sm:$0xff]  ;;  %v3550_v45 = vpack.c.bf16 %v171_v43, %v170_v42  ;;  %v349_v46 = vld [vmem:[%s4573_s11 + $0x8] sm:$0xff]  ;;  %v173_v48 = vld [vmem:[%s4569_s7 + $0x18] sm:$0xff]  ;;  %s4601_s30 = sld [smem:[#allocation6_spill]]  ;;  %vm1479_vm3 = vcmask 523264   ;;  %s3863_s3 = smov [#allocation2]  }
  0x11   :  { %v3566_v49 = vpack.c.bf16 %v349_v46, %v348_v44  ;;  %v3554_v50 = vpack.c.bf16 %v173_v48, %v172_v47  ;;  %v350_v51 = vld [vmem:[%s4573_s11 + $0x10] sm:$0xff]  ;;  %v351_v52 = vld [vmem:[%s4573_s11 + $0x18] sm:$0xff]  ;;  %v262_v54 = vld [vmem:[%s4571_s9] sm:$0xff] }
  0x12   :  { %3551 = vmatprep.subr.bf16.mxu1 %v3550_v45  ;;  %v3570_v53 = vpack.c.bf16 %v351_v52, %v350_v51  ;;  %v263_v55 = vld [vmem:[%s4571_s9 + $0x8] sm:$0xff]  ;;  %v3013_v2 = vld [vmem:[%s4568_s6] ss:$0 sm:$0xff]  ;;  %vm4078_vm1 = vmpackc.low %vm82_vm0, %vm82_vm0 }
  0x13   :  { %87 = vadd.xlane.f32.xlu0 %v86_v3  ;;  %3553 = vmatpush3.bf16.msra.mxu1 %v3550_v45  ;;  %v3558_v56 = vpack.c.bf16 %v263_v55, %v262_v54 }
  0x14   :  { %v3010_v21 = vld [vmem:[%s4595_s0] ss:$0 sm:$0xff]  ;;  %3567 = vmatprep.subr.bf16.mxu0 %v3566_v49  ;;  %3555 = vmatprep.subr.bf16.mxu1 %v3554_v50 }
  0x15   :  { %v3011_v23 = vld [vmem:[%s4596_s5] ss:$0 sm:$0xff]  ;;  %3569 = vmatpush3.bf16.msra.mxu0 %v3566_v49 }
  0x16   :  { %3571 = vmatprep.subr.bf16.mxu0 %v3570_v53 }
  0x17   :  { %3557 = vmatpush3.bf16.msra.mxu1 %v3554_v50 }
  0x18   :  { %3559 = vmatprep.subr.bf16.mxu1 %v3558_v56 }
  0x19   :  { %3573 = vmatpush3.bf16.msra.mxu0 %v3570_v53 }
  0x9c   :  { %v85_v4 = vpop.xlane.xlu0 %84 }
  0x9d   :  { %v90_v5 = vmul.f32 0.03125, %v85_v4 }
  0x9f   :  { %v92_v6 = vsub.f32 %v78_v0, %v90_v5  ;;  %v3012_v0 = vld [vmem:[%s4597_s27] ss:$0 sm:$0xff] }
  0xa0   :  { %v88_v7 = vpop.xlane.xlu0 %87 }
  0xa1   :  { %v91_v8 = vmul.f32 0.03125, %v88_v7  ;;  %v94_v9 = vmul.f32 %v92_v6, %v92_v6  ;;  %v264_v7 = vld [vmem:[%s4571_s9 + $0x10] sm:$0xff] }
  0xa3   :  { %v93_v10 = vsub.f32 %v79_v1, %v91_v8  ;;  %v96_v11 = vsel %vm82_vm0, %v94_v9, 0.0  ;;  %v265_v8 = vld [vmem:[%s4571_s9 + $0x18] sm:$0xff] }
  0xa4   :  { %97 = vadd.xlane.f32.xlu1 %v96_v11  ;;  %v3562_v11 = vpack.c.bf16 %v265_v8, %v264_v7 }
  0xa5   :  { %v95_v12 = vmul.f32 %v93_v10, %v93_v10 }
  0xa7   :  { %v99_v13 = vsel %vm82_vm0, %v95_v12, 0.0  ;;  %v3020_v12 = vld [vmem:[%s4574_s12] ss:$0 sm:$0xff] }
  0xa8   :  { %100 = vadd.xlane.f32.xlu1 %v99_v13  ;;  %v3014_v13 = vld [vmem:[%s4570_s8] ss:$0 sm:$0xff] }
 0x131   :  { %v98_v14 = vpop.xlane.xlu1 %97 }
 0x132   :  { %v102_v15 = vmul.f32 0.03125, %v98_v14 }
 0x134   :  { %v104_v16 = vadd.f32 1e-12, %v102_v15 }
 0x135   :  { %v101_v17 = vpop.xlane.xlu1 %100 }
 0x136   :  { %3745 = vrsqrt.f32 %v104_v16  ;;  %v103_v18 = vmul.f32 0.03125, %v101_v17  ;;  %v4061_v16 = vld [vmem:[%s4598_s25] ss:$0 sm:$0xff] }
 0x138   :  { %v105_v19 = vadd.f32 1e-12, %v103_v18 }
 0x13a   :  { %3747 = vrsqrt.f32 %v105_v19 }
 0x140   :  { %v3746_v20 = vpop.eup %3745 }
 0x141   :  { %v108_v22 = vmul.f32 %v3746_v20, %v92_v6 }
 0x143   :  { %v116_v24 = vmul.f32 %v3010_v21, %v108_v22 }
 0x144   :  { %v3748_v25 = vpop.eup %3747 }
 0x145   :  { %v3992_v26 = vadd.f32 %v3011_v23, %v116_v24  ;;  %v109_v27 = vmul.f32 %v3748_v25, %v93_v10  ;;  %v3017_v24 = vld [vmem:[%s4572_s10] ss:$0 sm:$0xff] }
 0x147   :  { %v128_v28 = vsel %vm82_vm0, %v3992_v26, 0.0  ;;  %v117_v29 = vmul.f32 %v3010_v21, %v109_v27 }
 0x148   :  { %129 = vadd.xlane.f32.xlu0 %v128_v28 }
 0x149   :  { %v3996_v30 = vadd.f32 %v3011_v23, %v117_v29 }
 0x14b   :  { %v131_v31 = vsel %vm82_vm0, %v3996_v30, 0.0 }
 0x14c   :  { %132 = vadd.xlane.f32.xlu1 %v131_v31  ;;  %v3837_v31 = vld [vmem:[%s4601_s30 + $0x8] sm:$0xff] }
 0x1d5   :  { %v130_v32 = vpop.xlane.xlu0 %129 }
 0x1d6   :  { %v134_v33 = vmul.f32 0.03125, %v130_v32 }
 0x1d8   :  { %v136_v34 = vsub.f32 %v3992_v26, %v134_v33 }
 0x1d9   :  { %v133_v35 = vpop.xlane.xlu1 %132 }
 0x1da   :  { %v135_v36 = vmul.f32 0.03125, %v133_v35  ;;  %v138_v37 = vmul.f32 %v136_v34, %v136_v34 }
 0x1dc   :  { %v137_v38 = vsub.f32 %v3996_v30, %v135_v36  ;;  %v140_v39 = vsel %vm82_vm0, %v138_v37, 0.0 }
 0x1dd   :  { %141 = vadd.xlane.f32.xlu0 %v140_v39  ;;  %v4125_v39 = vld [vmem:[%s4601_s30] sm:$0xff] }
 0x1de   :  { %v139_v40 = vmul.f32 %v137_v38, %v137_v38 }
 0x1e0   :  { %v143_v41 = vsel %vm82_vm0, %v139_v40, 0.0 }
 0x1e1   :  { %144 = vadd.xlane.f32.xlu1 %v143_v41 }
 0x26a   :  { %v142_v57 = vpop.xlane.xlu0 %141 }
 0x26b   :  { %v146_v58 = vmul.f32 0.03125, %v142_v57 }
 0x26d   :  { %v148_v59 = vadd.f32 1e-05, %v146_v58 }
 0x26e   :  { %v145_v60 = vpop.xlane.xlu1 %144 }
 0x26f   :  { %3749 = vrsqrt.f32 %v148_v59  ;;  %v147_v61 = vmul.f32 0.03125, %v145_v60 }
 0x271   :  { %v149_v62 = vadd.f32 1e-05, %v147_v61 }
 0x273   :  { %3751 = vrsqrt.f32 %v149_v62 }
 0x279   :  { %v3750_v63 = vpop.eup %3749 }
 0x27a   :  { %v152_v1 = vmul.f32 %v3750_v63, %v136_v34  ;;  %v4098_v34 = vld [vmem:[%s4598_s25 + $0x1] ss:$0 sm:$0xff] }
 0x27c   :  { %v160_v3 = vmul.f32 %v3012_v0, %v152_v1 }
 0x27d   :  { %v3752_v4 = vpop.eup %3751 }
 0x27e   :  { %v153_v5 = vmul.f32 %v3752_v4, %v137_v38  ;;  %v168_v6 = vadd.f32 %v3013_v2, %v160_v3  ;;  %v4120_v38 = vld [vmem:[%s4601_s30 + $0x8] sm:$0xff] }
 0x280   :  { %v161_v9 = vmul.f32 %v3012_v0, %v153_v5  ;;  %3298 = vmatprep.mubr.msk.f32.mxu1 %vm82_vm0, %v168_v6  ;;  %3320 = vmatprep.mubr.msk.f32.mxu0 %vm82_vm0, %v168_v6 }
 0x282   :  { %v169_v10 = vadd.f32 %v3013_v2, %v161_v9 }
 0x284   :  { %3299 = vmatmul.mubr.msk.f32.vlgmr.msra.gmra.mrb[0].mxu1 %vm82_vm0, %v169_v10  ;;  %3321 = vmatmul.mubr.msk.f32.vlgmr.msra.gmra.mrb[0].mxu0 %vm82_vm0, %v169_v10 }
 0x285   :  { %3561 = vmatpush3.bf16.msra.mxu1 %v3558_v56  ;;  %3309 = vmatprep.mubr.msk.f32.mxu1 %vm82_vm0, %v168_v6 }
 0x286   :  { %3563 = vmatprep.subr.bf16.mxu1 %v3562_v11 }
 0x289   :  { %3565 = vmatpush3.bf16.msra.mxu1 %v3562_v11 }
 0x28c   :  { %3310 = vmatmul.mubr.msk.f32.vlgmr.msra.gmra.mrb[2].mxu1 %vm82_vm0, %v169_v10 }
 0x357   :  { %v3300_v14 = vpop.f32.mrb[0].mxu1  ;;  %v3322_v15 = vpop.f32.mrb[0].mxu0 }
 0x358   :  { %v431_v17 = vadd.f32 %v3322_v15, %v3020_v12  ;;  %v253_v18 = vpop.f32.mrb[1].mxu1  ;;  %v425_v19 = vpop.f32.mrb[1].mxu0  ;;  %v4090_v33 = vadd.f32 %v3300_v14, %v3014_v13 }
 0x359   :  { %v4063_v20 = vadd.f32 %v3014_v13, %v253_v18  ;;  %v426_v21 = vadd.f32 %v3020_v12, %v425_v19  ;;  %v4148_v19 = vld [vmem:[%s4598_s25 + $0x2] ss:$0 sm:$0xff] }
 0x35a   :  { %v441_v35 = vmul.f32 %v4061_v16, %v4090_v33  ;;  %v642_v37 = vmul.f32 %v4098_v34, %v4090_v33 }
 0x35b   :  { %v4065_v22 = vpack.c.bf16 %v431_v17, %v426_v21  ;;  %v440_v23 = vmul.f32 %v4061_v16, %v4063_v20  ;;  %v641_v36 = vmul.f32 %v4098_v34, %v4063_v20 }
 0x35d   :  { %3327 = vmatprep.mubr.msk.f32.mxu1 %vm82_vm0, %v440_v23  ;;  %3581 = vmatprep.subr.bf16.mxu0 %v4065_v22 }
 0x35e   :  { %3583 = vmatpush3.bf16.msra.mxu0 %v4065_v22 }
 0x35f   :  { %v3311_v25 = vpop.f32.mrb[2].mxu1  ;;  %3591 = vmatprep.subr.bf16.mxu0 %v4065_v22 }
 0x360   :  { %v345_v27 = vadd.f32 %v3311_v25, %v3017_v24  ;;  %v339_v28 = vpop.f32.mrb[3].mxu1  ;;  %v838_v25 = vmul.f32 %v4148_v19, %v4090_v33 }
 0x361   :  { %v340_v29 = vadd.f32 %v3017_v24, %v339_v28  ;;  %v837_v24 = vmul.f32 %v4148_v19, %v4063_v20 }
 0x363   :  { %v4082_v32 = vpack.c.bf16 %v345_v27, %v340_v29 }
 0x365   :  { %3576 = vmatprep.subr.msk.bf16.mxu1 %vm4078_vm1, %v4082_v32 }
 0x366   :  { %3579 = vmatpush3.bf16.xpose.msk.msra.mxu1 %vm4078_vm1, %v4082_v32 }
 0x367   :  { %3586 = vmatprep.subr.msk.bf16.mxu1 %vm4078_vm1, %v4082_v32 }
 0x36d   :  { %3328 = vmatmul.mubr.msk.f32.vlgmr.msra.gmra.mrb[4].mxu1 %vm82_vm0, %v441_v35 }
 0x36e   :  { %3589 = vmatpush3.bf16.xpose.msk.msra.mxu1 %vm4078_vm1, %v4082_v32  ;;  %3341 = vmatprep.mubr.msk.f32.mxu1 %vm82_vm0, %v641_v36 }
 0x36f   :  { %3601 = vmatprep.subr.bf16.mxu1 %v4065_v22 }
 0x375   :  { %3342 = vmatmul.mubr.msk.f32.vlgmr.msra.gmra.mrb[6].mxu1 %vm82_vm0, %v642_v37 }
 0x376   :  { %3603 = vmatpush3.bf16.msra.mxu1 %v4065_v22 }
 0x377   :  { %3606 = vmatprep.subr.msk.bf16.mxu1 %vm4078_vm1, %v4082_v32 }
 0x440   :  { %v3329_v40 = vpop.f32.mrb[4].mxu1 }
 0x441   :  { %v526_v41 = vadd.f32 %v3329_v40, %v4120_v38  ;;  %v520_v42 = vpop.f32.mrb[5].mxu1 }
 0x442   :  { %v521_v43 = vadd.f32 %v520_v42, %v4125_v39 }
 0x443   :  { %v533_v44 = vsel %vm529_vm2, %v526_v41, -inf }
 0x444   :  { %534 = vmax.xlane.f32.xlu1 %v533_v44  ;;  %v530_v45 = vsel %vm529_vm2, %v521_v43, -inf }
 0x445   :  { %531 = vmax.xlane.f32.xlu0 %v530_v45 }
 0x448   :  { %v3343_v46 = vpop.f32.mrb[6].mxu1 }
 0x449   :  { %v721_v47 = vadd.f32 %v3343_v46, %v4120_v38  ;;  %v715_v48 = vpop.f32.mrb[7].mxu1 }
 0x44a   :  { %v716_v49 = vadd.f32 %v715_v48, %v4125_v39 }
 0x44b   :  { %v727_v50 = vsel %vm529_vm2, %v721_v47, -inf }
 0x44c   :  { %728 = vmax.xlane.f32.xlu1 %v727_v50  ;;  %v724_v51 = vsel %vm529_vm2, %v716_v49, -inf }
 0x44d   :  { %725 = vmax.xlane.f32.xlu0 %v724_v51 }
 0x4d1   :  { %v535_v52 = vpop.xlane.xlu1 %534 }
 0x4d2   :  { %v537_v53 = vsub.f32 %v526_v41, %v535_v52  ;;  %v532_v54 = vpop.xlane.xlu0 %531 }
 0x4d3   :  { %v536_v55 = vsub.f32 %v521_v43, %v532_v54 }
 0x4d4   :  { %v540_v56 = vmul.f32 1.442695, %v537_v53 }
 0x4d5   :  { %v538_v57 = vmul.f32 1.442695, %v536_v55 }
 0x4d6   :  { %3753 = vpow2.f32 %v540_v56 }
 0x4d7   :  { %3755 = vpow2.f32 %v538_v57 }
 0x4d9   :  { %v729_v58 = vpop.xlane.xlu1 %728 }
 0x4da   :  { %v731_v59 = vsub.f32 %v721_v47, %v729_v58  ;;  %v726_v60 = vpop.xlane.xlu0 %725 }
 0x4db   :  { %v730_v61 = vsub.f32 %v716_v49, %v726_v60 }
 0x4dc   :  { %v734_v62 = vmul.f32 1.442695, %v731_v59 }
 0x4dd   :  { %v732_v63 = vmul.f32 1.442695, %v730_v61 }
 0x4de   :  { %3757 = vpow2.f32 %v734_v62 }
 0x4df   :  { %3759 = vpow2.f32 %v732_v63  ;;  %v4176_v63 = vld [vmem:[%s4598_s25 + $0x3] ss:$0 sm:$0xff] }
 0x4e0   :  { %v3754_v0 = vpop.eup %3753 }
 0x4e1   :  { %v3756_v1 = vpop.eup %3755  ;;  %v545_v2 = vsel %vm529_vm2, %v3754_v0, 0.0 }
 0x4e2   :  { %546 = vadd.xlane.f32.xlu1 %v545_v2  ;;  %v542_v3 = vsel %vm529_vm2, %v3756_v1, 0.0  ;;  %v1033_v2 = vmul.f32 %v4176_v63, %v4063_v20 }
 0x4e3   :  { %543 = vadd.xlane.f32.xlu0 %v542_v3  ;;  %v1034_v3 = vmul.f32 %v4176_v63, %v4090_v33 }
 0x4e8   :  { %v3758_v4 = vpop.eup %3757 }
 0x4e9   :  { %v3760_v5 = vpop.eup %3759  ;;  %v739_v6 = vsel %vm529_vm2, %v3758_v4, 0.0 }
 0x4ea   :  { %740 = vadd.xlane.f32.xlu1 %v739_v6  ;;  %v736_v7 = vsel %vm529_vm2, %v3760_v5, 0.0 }
 0x4eb   :  { %737 = vadd.xlane.f32.xlu0 %v736_v7 }
 0x56f   :  { %v547_v8 = vpop.xlane.xlu1 %546 }
 0x570   :  { %3761 = vrcp.f32 %v547_v8  ;;  %v544_v9 = vpop.xlane.xlu0 %543 }
 0x571   :  { %3763 = vrcp.f32 %v544_v9 }
 0x577   :  { %v741_v10 = vpop.xlane.xlu1 %740 }
 0x578   :  { %3765 = vrcp.f32 %v741_v10  ;;  %v738_v11 = vpop.xlane.xlu0 %737 }
 0x579   :  { %3767 = vrcp.f32 %v738_v11 }
 0x57a   :  { %v3762_v12 = vpop.eup %3761 }
 0x57b   :  { %v3764_v13 = vpop.eup %3763  ;;  %v551_v15 = vmul.f32 %v3762_v12, %v3754_v0 }
 0x57c   :  { %v550_v14 = vmul.f32 %v3764_v13, %v3756_v1 }
 0x57e   :  { %3334 = vmatprep.mubr.msk.f32.mxu0 %vm529_vm2, %v550_v14 }
 0x57f   :  { %3335 = vmatmul.mubr.msk.f32.vlgmr.msra.gmra.mrb[2].mxu0 %vm529_vm2, %v551_v15 }
 0x580   :  { %3593 = vmatpush3.bf16.msra.mxu0 %v4065_v22 }
 0x581   :  { %3596 = vmatprep.subr.msk.bf16.mxu0 %vm4078_vm1, %v4082_v32 }
 0x582   :  { %v3766_v17 = vpop.eup %3765 }
 0x583   :  { %v3768_v18 = vpop.eup %3767  ;;  %v745_v23 = vmul.f32 %v3766_v17, %v3758_v4 }
 0x584   :  { %v744_v21 = vmul.f32 %v3768_v18, %v3760_v5 }
 0x586   :  { %3348 = vmatprep.mubr.msk.f32.mxu0 %vm529_vm2, %v744_v21 }
 0x587   :  { %3349 = vmatmul.mubr.msk.f32.vlgmr.msra.gmra.mrb[4].mxu0 %vm529_vm2, %v745_v23 }
 0x588   :  { %3355 = vmatprep.mubr.msk.f32.mxu0 %vm82_vm0, %v837_v24 }
 0x589   :  { %3599 = vmatpush3.bf16.xpose.msk.msra.mxu0 %vm4078_vm1, %v4082_v32 }
 0x58a   :  { %3611 = vmatprep.subr.bf16.mxu0 %v4065_v22 }
 0x590   :  { %3356 = vmatmul.mubr.msk.f32.vlgmr.msra.gmra.mrb[6].mxu0 %vm82_vm0, %v838_v25 }
 0x591   :  { %3613 = vmatpush3.bf16.msra.mxu0 %v4065_v22 }
 0x652   :  { %v3336_v27 = vpop.f32.mrb[2].mxu0 }
 0x653   :  { %v624_v28 = vpop.f32.mrb[3].mxu0  ;;  %v634_v35 = vmul.f32 %v3336_v27, %v4061_v16 }
 0x654   :  { %v633_v40 = vmul.f32 %v4061_v16, %v624_v28  ;;  %v1223_v28 = vld [vmem:[%s4575_s13] sm:$0xff] }
 0x65a   :  { %v3350_v29 = vpop.f32.mrb[4].mxu0 }
 0x65b   :  { %v828_v36 = vmul.f32 %v3350_v29, %v4098_v34  ;;  %v818_v37 = vpop.f32.mrb[5].mxu0  ;;  %v1224_v29 = vld [vmem:[%s4575_s13 + $0x8] sm:$0xff] }
 0x65c   :  { %v827_v41 = vmul.f32 %v4098_v34, %v818_v37 }
 0x65d   :  { %v830_v42 = vadd.f32 %v828_v36, %v634_v35  ;;  %v3614_v35 = vpack.c.bf16 %v1224_v29, %v1223_v28 }
 0x65e   :  { %v829_v43 = vadd.f32 %v827_v41, %v633_v40 }
 0x65f   :  { %3615 = vmatprep.subr.bf16.mxu0 %v3614_v35 }
 0x663   :  { %v3357_v44 = vpop.f32.mrb[6].mxu0 }
 0x664   :  { %v917_v45 = vadd.f32 %v3357_v44, %v4120_v38  ;;  %v911_v46 = vpop.f32.mrb[7].mxu0  ;;  %v1225_v44 = vld [vmem:[%s4575_s13 + $0x10] sm:$0xff] }
 0x665   :  { %v912_v22 = vadd.f32 %v911_v46, %v4125_v39 }
 0x666   :  { %v923_v47 = vsel %vm529_vm2, %v917_v45, -inf }
 0x667   :  { %924 = vmax.xlane.f32.xlu1 %v923_v47  ;;  %v920_v48 = vsel %vm529_vm2, %v912_v22, -inf }
 0x668   :  { %921 = vmax.xlane.f32.xlu0 %v920_v48 }
 0x6f4   :  { %v925_v49 = vpop.xlane.xlu1 %924 }
 0x6f5   :  { %v927_v50 = vsub.f32 %v917_v45, %v925_v49  ;;  %v922_v51 = vpop.xlane.xlu0 %921  ;;  %v1226_v45 = vld [vmem:[%s4575_s13 + $0x18] sm:$0xff] }
 0x6f6   :  { %v926_v52 = vsub.f32 %v912_v22, %v922_v51  ;;  %v3618_v46 = vpack.c.bf16 %v1226_v45, %v1225_v44  ;;  %v1469_v44 = vld [vmem:[%s4581_s19 + $0x28] sm:$0xff] }
 0x6f7   :  { %v930_v53 = vmul.f32 1.442695, %v927_v50 }
 0x6f8   :  { %v928_v54 = vmul.f32 1.442695, %v926_v52  ;;  %v3051_v52 = vld [vmem:[%s4576_s14] ss:$0 sm:$0xff] }
 0x6f9   :  { %3769 = vpow2.f32 %v930_v53 }
 0x6fa   :  { %3771 = vpow2.f32 %v928_v54 }
 0x703   :  { %v3770_v55 = vpop.eup %3769 }
 0x704   :  { %v3772_v56 = vpop.eup %3771  ;;  %v935_v57 = vsel %vm529_vm2, %v3770_v55, 0.0 }
 0x705   :  { %936 = vadd.xlane.f32.xlu1 %v935_v57  ;;  %v932_v58 = vsel %vm529_vm2, %v3772_v56, 0.0 }
 0x706   :  { %933 = vadd.xlane.f32.xlu0 %v932_v58 }
 0x792   :  { %v937_v59 = vpop.xlane.xlu1 %936 }
 0x793   :  { %3773 = vrcp.f32 %v937_v59  ;;  %v934_v60 = vpop.xlane.xlu0 %933 }
 0x794   :  { %3775 = vrcp.f32 %v934_v60 }
 0x79d   :  { %v3774_v61 = vpop.eup %3773 }
 0x79e   :  { %v3776_v62 = vpop.eup %3775  ;;  %v941_v1 = vmul.f32 %v3774_v61, %v3770_v55 }
 0x79f   :  { %v940_v0 = vmul.f32 %v3776_v62, %v3772_v56 }
 0x7a1   :  { %3362 = vmatprep.mubr.msk.f32.mxu1 %vm529_vm2, %v940_v0 }
 0x7a2   :  { %3363 = vmatmul.mubr.msk.f32.vlgmr.msra.gmra.mrb[8].mxu1 %vm529_vm2, %v941_v1 }
 0x7a3   :  { %3609 = vmatpush3.bf16.xpose.msk.msra.mxu1 %vm4078_vm1, %v4082_v32  ;;  %3369 = vmatprep.mubr.msk.f32.mxu1 %vm82_vm0, %v1033_v2 }
 0x7aa   :  { %3370 = vmatmul.mubr.msk.f32.vlgmr.msra.gmra.mrb[10].mxu1 %vm82_vm0, %v1034_v3 }
 0x875   :  { %v3364_v4 = vpop.f32.mrb[8].mxu1 }
 0x876   :  { %v1024_v5 = vmul.f32 %v3364_v4, %v4148_v19  ;;  %v1014_v6 = vpop.f32.mrb[9].mxu1 }
 0x877   :  { %v1023_v7 = vmul.f32 %v4148_v19, %v1014_v6  ;;  %v1361_v6 = vld [vmem:[%s4579_s17] sm:$0xff] }
 0x878   :  { %v1026_v20 = vadd.f32 %v1024_v5, %v830_v42 }
 0x879   :  { %v1025_v8 = vadd.f32 %v1023_v7, %v829_v43  ;;  %v1362_v7 = vld [vmem:[%s4579_s17 + $0x8] sm:$0xff] }
 0x87d   :  { %v3371_v9 = vpop.f32.mrb[10].mxu1 }
 0x87e   :  { %v1113_v10 = vadd.f32 %v3371_v9, %v4120_v38  ;;  %v1107_v11 = vpop.f32.mrb[11].mxu1  ;;  %v1364_v9 = vld [vmem:[%s4579_s17 + $0x18] sm:$0xff] }
 0x87f   :  { %v1108_v32 = vadd.f32 %v1107_v11, %v4125_v39 }
 0x880   :  { %v1119_v12 = vsel %vm529_vm2, %v1113_v10, -inf }
 0x881   :  { %1120 = vmax.xlane.f32.xlu1 %v1119_v12  ;;  %v1116_v33 = vsel %vm529_vm2, %v1108_v32, -inf }
 0x882   :  { %1117 = vmax.xlane.f32.xlu0 %v1116_v33 }
 0x90e   :  { %v1121_v13 = vpop.xlane.xlu1 %1120 }
 0x90f   :  { %v1123_v14 = vsub.f32 %v1113_v10, %v1121_v13  ;;  %v1118_v15 = vpop.xlane.xlu0 %1117 }
 0x910   :  { %v1122_v17 = vsub.f32 %v1108_v32, %v1118_v15 }
 0x911   :  { %v1126_v18 = vmul.f32 1.442695, %v1123_v14 }
 0x912   :  { %v1124_v21 = vmul.f32 1.442695, %v1122_v17  ;;  %v3054_v17 = vld [vmem:[%s4577_s15] ss:$0 sm:$0xff] }
 0x913   :  { %3777 = vpow2.f32 %v1126_v18 }
 0x914   :  { %3779 = vpow2.f32 %v1124_v21 }
 0x91d   :  { %v3778_v23 = vpop.eup %3777 }
 0x91e   :  { %v3780_v24 = vpop.eup %3779  ;;  %v1131_v25 = vsel %vm529_vm2, %v3778_v23, 0.0 }
 0x91f   :  { %1132 = vadd.xlane.f32.xlu1 %v1131_v25  ;;  %v1128_v27 = vsel %vm529_vm2, %v3780_v24, 0.0 }
 0x920   :  { %1129 = vadd.xlane.f32.xlu0 %v1128_v27 }
 0x9ac   :  { %v1133_v36 = vpop.xlane.xlu1 %1132 }
 0x9ad   :  { %3781 = vrcp.f32 %v1133_v36  ;;  %v1130_v37 = vpop.xlane.xlu0 %1129  ;;  %v1465_v36 = vld [vmem:[%s4581_s19 + $0x8] sm:$0xff] }
 0x9ae   :  { %3783 = vrcp.f32 %v1130_v37 }
 0x9b7   :  { %v3782_v40 = vpop.eup %3781 }
 0x9b8   :  { %v3784_v41 = vpop.eup %3783  ;;  %v1137_v43 = vmul.f32 %v3782_v40, %v3778_v23  ;;  %v1466_v40 = vld [vmem:[%s4581_s19 + $0x10] sm:$0xff] }
 0x9b9   :  { %v1136_v42 = vmul.f32 %v3784_v41, %v3780_v24  ;;  %v3055_v24 = vld [vmem:[%s4578_s16] ss:$0 sm:$0xff]  ;;  %v1467_v41 = vld [vmem:[%s4581_s19 + $0x18] sm:$0xff] }
 0x9bb   :  { %3376 = vmatprep.mubr.msk.f32.mxu0 %vm529_vm2, %v1136_v42  ;;  %v3634_v42 = vpack.c.bf16 %v1467_v41, %v1466_v40 }
 0x9bc   :  { %3377 = vmatmul.mubr.msk.f32.vlgmr.msra.gmra.mrb[8].mxu0 %vm529_vm2, %v1137_v43  ;;  %v1468_v43 = vld [vmem:[%s4581_s19 + $0x20] sm:$0xff] }
 0x9bd   :  { %3617 = vmatpush3.bf16.msra.mxu0 %v3614_v35  ;;  %v1464_v35 = vld [vmem:[%s4581_s19] sm:$0xff]  ;;  %v3638_v45 = vpack.c.bf16 %v1469_v44, %v1468_v43 }
 0x9be   :  { %3619 = vmatprep.subr.bf16.mxu0 %v3618_v46  ;;  %v3630_v37 = vpack.c.bf16 %v1465_v36, %v1464_v35  ;;  %v3074_v36 = vld [vmem:[%s4571_s9 + $0x20] sm:$0xff] }
 0x9c1   :  { %3621 = vmatpush3.bf16.msra.mxu0 %v3618_v46  ;;  %v1470_v46 = vld [vmem:[%s4581_s19 + $0x30] sm:$0xff] }
 0x9c2   :  { %3631 = vmatprep.subr.bf16.mxu0 %v3630_v37 }
 0xa8f   :  { %v3378_v22 = vpop.f32.mrb[8].mxu0 }
 0xa90   :  { %v1220_v47 = vmul.f32 %v3378_v22, %v4176_v63  ;;  %v1210_v48 = vpop.f32.mrb[9].mxu0  ;;  %v1471_v22 = vld [vmem:[%s4581_s19 + $0x38] sm:$0xff] }
 0xa91   :  { %v1219_v49 = vmul.f32 %v4176_v63, %v1210_v48  ;;  %v3056_v48 = vld [vmem:[%s4580_s18] ss:$0 sm:$0xff] }
 0xa92   :  { %v1222_v50 = vadd.f32 %v1220_v47, %v1026_v20  ;;  %v3622_v20 = vpack.c.bf16 %v1362_v7, %v1361_v6  ;;  %v3642_v47 = vpack.c.bf16 %v1471_v22, %v1470_v46 }
 0xa93   :  { %v1221_v51 = vadd.f32 %v1219_v49, %v1025_v8  ;;  %v1363_v8 = vld [vmem:[%s4579_s17 + $0x10] sm:$0xff] }
 0xa94   :  { %3623 = vmatprep.subr.bf16.mxu1 %v3622_v20  ;;  %v3626_v10 = vpack.c.bf16 %v1364_v9, %v1363_v8 }
 0xa95   :  { %3387 = vmatprep.mubr.msk.f32.mxu0 %vm82_vm0, %v1221_v51  ;;  %3625 = vmatpush3.bf16.msra.mxu1 %v3622_v20 }
 0xa96   :  { %3388 = vmatmul.mubr.msk.f32.vlgmr.msra.gmra.mrb[10].mxu0 %vm82_vm0, %v1222_v50  ;;  %3627 = vmatprep.subr.bf16.mxu1 %v3626_v10 }
 0xa97   :  { %3633 = vmatpush3.bf16.msra.mxu0 %v3630_v37  ;;  %v3075_v37 = vld [vmem:[%s4571_s9 + $0x28] sm:$0xff] }
 0xa98   :  { %3635 = vmatprep.subr.bf16.mxu0 %v3634_v42  ;;  %v3654_v40 = vpack.c.bf16 %v3075_v37, %v3074_v36 }
 0xa99   :  { %3629 = vmatpush3.bf16.msra.mxu1 %v3626_v10 }
 0xa9b   :  { %3637 = vmatpush3.bf16.msra.mxu0 %v3634_v42 }
 0xa9c   :  { %3639 = vmatprep.subr.bf16.mxu0 %v3638_v45 }
 0xa9f   :  { %3641 = vmatpush3.bf16.msra.mxu0 %v3638_v45 }
 0xaa0   :  { %3643 = vmatprep.subr.bf16.mxu0 %v3642_v47 }
 0xaa3   :  { %3645 = vmatpush3.bf16.msra.mxu0 %v3642_v47  ;;  %v3064_v47 = vld [vmem:[%s4597_s27 + $0x1] ss:$0 sm:$0xff] }
 0xb69   :  { %v3389_v53 = vpop.f32.mrb[10].mxu0 }
 0xb6a   :  { %v1312_v54 = vadd.f32 %v3389_v53, %v3051_v52  ;;  %v1306_v55 = vpop.f32.mrb[11].mxu0 }
 0xb6b   :  { %v1307_v56 = vadd.f32 %v3051_v52, %v1306_v55 }
 0xb6c   :  { %v4219_v57 = vadd.f32 %v1312_v54, %v3996_v30 }
 0xb6d   :  { %v4222_v58 = vadd.f32 %v1307_v56, %v3992_v26 }
 0xb6e   :  { %v1322_v59 = vsel %vm82_vm0, %v4219_v57, 0.0 }
 0xb6f   :  { %1323 = vadd.xlane.f32.xlu1 %v1322_v59  ;;  %v1319_v60 = vsel %vm82_vm0, %v4222_v58, 0.0 }
 0xb70   :  { %1320 = vadd.xlane.f32.xlu0 %v1319_v60 }
 0xbfc   :  { %v1324_v61 = vpop.xlane.xlu1 %1323 }
 0xbfd   :  { %v1326_v62 = vmul.f32 0.03125, %v1324_v61  ;;  %v1321_v0 = vpop.xlane.xlu0 %1320 }
 0xbfe   :  { %v1325_v1 = vmul.f32 0.03125, %v1321_v0 }
 0xbff   :  { %v1328_v2 = vsub.f32 %v4219_v57, %v1326_v62 }
 0xc00   :  { %v1327_v30 = vsub.f32 %v4222_v58, %v1325_v1 }
 0xc01   :  { %v1330_v3 = vmul.f32 %v1328_v2, %v1328_v2 }
 0xc02   :  { %v1329_v4 = vmul.f32 %v1327_v30, %v1327_v30 }
 0xc03   :  { %v1334_v26 = vsel %vm82_vm0, %v1330_v3, 0.0 }
 0xc04   :  { %1335 = vadd.xlane.f32.xlu1 %v1334_v26  ;;  %v1331_v5 = vsel %vm82_vm0, %v1329_v4, 0.0 }
 0xc05   :  { %1332 = vadd.xlane.f32.xlu0 %v1331_v5 }
 0xc91   :  { %v1336_v11 = vpop.xlane.xlu1 %1335 }
 0xc92   :  { %v1338_v32 = vmul.f32 0.03125, %v1336_v11  ;;  %v1333_v12 = vpop.xlane.xlu0 %1332 }
 0xc93   :  { %v1337_v33 = vmul.f32 0.03125, %v1333_v12 }
 0xc94   :  { %v1340_v13 = vadd.f32 1e-05, %v1338_v32 }
 0xc95   :  { %v1339_v14 = vadd.f32 1e-05, %v1337_v33 }
 0xc96   :  { %3785 = vrsqrt.f32 %v1340_v13 }
 0xc97   :  { %3787 = vrsqrt.f32 %v1339_v14  ;;  %v3066_v14 = vld [vmem:[%s4569_s7 + $0x20] sm:$0xff] }
 0xca0   :  { %v3786_v15 = vpop.eup %3785 }
 0xca1   :  { %v3788_v18 = vpop.eup %3787  ;;  %v1344_v21 = vmul.f32 %v3786_v15, %v1328_v2  ;;  %v3059_v2 = vld [vmem:[%s4582_s20] ss:$0 sm:$0xff]  ;;  %v3067_v15 = vld [vmem:[%s4569_s7 + $0x28] sm:$0xff] }
 0xca2   :  { %v1343_v23 = vmul.f32 %v3788_v18, %v1327_v30  ;;  %v3082_v18 = vld [vmem:[%s4573_s11 + $0x20] sm:$0xff] }
 0xca3   :  { %v1352_v25 = vmul.f32 %v3054_v17, %v1344_v21  ;;  %v3083_v21 = vld [vmem:[%s4573_s11 + $0x28] sm:$0xff] }
 0xca4   :  { %v1351_v27 = vmul.f32 %v3054_v17, %v1343_v23  ;;  %v3646_v17 = vpack.c.bf16 %v3067_v15, %v3066_v14  ;;  %v3662_v23 = vpack.c.bf16 %v3083_v21, %v3082_v18 }
 0xca5   :  { %v1360_v29 = vadd.f32 %v3055_v24, %v1352_v25  ;;  %v3069_v25 = vld [vmem:[%s4569_s7 + $0x38] sm:$0xff] }
 0xca6   :  { %v1359_v28 = vadd.f32 %v3055_v24, %v1351_v27  ;;  %3647 = vmatprep.subr.bf16.mxu1 %v3646_v17  ;;  %3663 = vmatprep.subr.bf16.mxu0 %v3662_v23  ;;  %v3068_v24 = vld [vmem:[%s4569_s7 + $0x30] sm:$0xff] }
 0xca7   :  { %v3084_v27 = vld [vmem:[%s4573_s11 + $0x30] sm:$0xff] }
 0xca8   :  { %3398 = vmatprep.mubr.msk.f32.mxu1 %vm82_vm0, %v1359_v28  ;;  %v3650_v28 = vpack.c.bf16 %v3069_v25, %v3068_v24 }
 0xca9   :  { %3399 = vmatmul.mubr.msk.f32.vlgmr.msra.gmra.mrb[12].mxu1 %vm82_vm0, %v1360_v29  ;;  %v3085_v29 = vld [vmem:[%s4573_s11 + $0x38] sm:$0xff] }
 0xcaa   :  { %3649 = vmatpush3.bf16.msra.mxu1 %v3646_v17  ;;  %v3666_v35 = vpack.c.bf16 %v3085_v29, %v3084_v27 }
 0xcab   :  { %3651 = vmatprep.subr.bf16.mxu1 %v3650_v28 }
 0xcae   :  { %3653 = vmatpush3.bf16.msra.mxu1 %v3650_v28 }
 0xcaf   :  { %3655 = vmatprep.subr.bf16.mxu1 %v3654_v40 }
 0xd7c   :  { %v3400_v49 = vpop.f32.mrb[12].mxu1 }
 0xd7d   :  { %v1450_v50 = vadd.f32 %v3400_v49, %v3056_v48  ;;  %v1444_v51 = vpop.f32.mrb[13].mxu1 }
 0xd7e   :  { %v1445_v52 = vadd.f32 %v3056_v48, %v1444_v51  ;;  %v3065_v51 = vld [vmem:[%s4568_s6 + $0x1] ss:$0 sm:$0xff]  ;;  %s2996_s6 = sshll.u32 %s3863_s3, 4  ;;  %s2997_s6 = int_to_ptr.vmem [resolvable:$true] %s2996_s6 }
 0xd7f   :  { %v1457_v53 = vmul.f32 0.70710677, %v1450_v50  ;;  %v1454_v62 = vmul.f32 0.5, %v1450_v50  ;;  %p3844_p1 = scmp.lt.s32.totalorder %s2997_s6, %s2997_s6 }
 0xd80   :  { %v1456_v54 = vmul.f32 0.70710677, %v1445_v52  ;;  %v1453_v60 = vmul.f32 0.5, %v1445_v52 }
 0xd81   :  { %3789 = verf.f32 %v1457_v53 }
 0xd82   :  { %3791 = verf.f32 %v1456_v54  ;;  %v3076_v54 = vld [vmem:[%s4571_s9 + $0x30] sm:$0xff] }
 0xd8b   :  { %v3790_v55 = vpop.eup %3789 }
 0xd8c   :  { %v3792_v56 = vpop.eup %3791  ;;  %v1461_v59 = vadd.f32 1.0, %v3790_v55  ;;  %v3077_v55 = vld [vmem:[%s4571_s9 + $0x38] sm:$0xff]  ;;  %s3839_s9 = scalar_lea.vmem %s2997_s6, 256 }
 0xd8d   :  { %v1460_v61 = vadd.f32 1.0, %v3792_v56  ;;  %p3840_p0 = scmp.ne.s32.totalorder %s2997_s6, %s3839_s9  ;;  %p3845_p2 = scmp.lt.s32.totalorder %s3839_s9, %s3839_s9 }
 0xd8e   :  { %v1463_v1 = vmul.f32 %v1461_v59, %v1454_v62  ;;  %v3071_v62 = vld [vmem:[%s4570_s8 + $0x1] ss:$0 sm:$0xff] }
 0xd8f   :  { %v1462_v0 = vmul.f32 %v1460_v61, %v1453_v60  ;;  %v3658_v60 = vpack.c.bf16 %v3077_v55, %v3076_v54  ;;  %v3087_v61 = vld [vmem:[%s4574_s12 + $0x1] ss:$0 sm:$0xff]  ;;  %p3846_p3 = por %p3845_p2, %p3844_p1 }
 0xd91   :  { %3417 = vmatprep.mubr.msk.f32.mxu0 %vm1479_vm3, %v1462_v0  ;;  %p3847_p4 = pnand %p3846_p3, %p3840_p0 }
 0xd92   :  { %3418 = vmatmul.mubr.msk.f32.vlgmr.msra.gmra.mrb[12].mxu0 %vm1479_vm3, %v1463_v1 }
 0xd93   :  { %3665 = vmatpush3.bf16.msra.mxu0 %v3662_v23 }
 0xd94   :  { %3667 = vmatprep.subr.bf16.mxu0 %v3666_v35 }
 0xd97   :  { %3669 = vmatpush3.bf16.msra.mxu0 %v3666_v35 }
 0xe65   :  { %v3419_v30 = vpop.f32.mrb[12].mxu0 }
 0xe66   :  { %v1558_v3 = vadd.f32 %v3419_v30, %v3059_v2  ;;  %v1552_v4 = vpop.f32.mrb[13].mxu0 }
 0xe67   :  { %v1553_v26 = vadd.f32 %v3059_v2, %v1552_v4 }
 0xe68   :  { %v4285_v5 = vadd.f32 %v1558_v3, %v4219_v57 }
 0xe69   :  { %v4288_v6 = vadd.f32 %v1553_v26, %v4222_v58 }
 0xe6a   :  { %v1570_v7 = vsel %vm82_vm0, %v4285_v5, 0.0 }
 0xe6b   :  { %1571 = vadd.xlane.f32.xlu1 %v1570_v7  ;;  %v1567_v20 = vsel %vm82_vm0, %v4288_v6, 0.0 }
 0xe6c   :  { %1568 = vadd.xlane.f32.xlu0 %v1567_v20 }
 0xef8   :  { %v1572_v8 = vpop.xlane.xlu1 %1571 }
 0xef9   :  { %v1574_v9 = vmul.f32 0.03125, %v1572_v8  ;;  %v1569_v10 = vpop.xlane.xlu0 %1568  ;;  %v3079_v8 = vld [vmem:[%s4572_s10 + $0x1] ss:$0 sm:$0xff] }
 0xefa   :  { %v1573_v11 = vmul.f32 0.03125, %v1569_v10 }
 0xefb   :  { %v1576_v32 = vsub.f32 %v4285_v5, %v1574_v9 }
 0xefc   :  { %v1575_v57 = vsub.f32 %v4288_v6, %v1573_v11 }
 0xefd   :  { %v1578_v12 = vmul.f32 %v1576_v32, %v1576_v32 }
 0xefe   :  { %v1577_v33 = vmul.f32 %v1575_v57, %v1575_v57 }
 0xeff   :  { %v1582_v58 = vsel %vm82_vm0, %v1578_v12, 0.0 }
 0xf00   :  { %1583 = vadd.xlane.f32.xlu1 %v1582_v58  ;;  %v1579_v13 = vsel %vm82_vm0, %v1577_v33, 0.0 }
 0xf01   :  { %1580 = vadd.xlane.f32.xlu0 %v1579_v13 }
 0xf8d   :  { %v1584_v41 = vpop.xlane.xlu1 %1583 }
 0xf8e   :  { %v1586_v42 = vmul.f32 0.03125, %v1584_v41  ;;  %v1581_v43 = vpop.xlane.xlu0 %1580 }
 0xf8f   :  { %v1585_v44 = vmul.f32 0.03125, %v1581_v43 }
 0xf90   :  { %v1588_v45 = vadd.f32 1e-05, %v1586_v42 }
 0xf91   :  { %v1587_v46 = vadd.f32 1e-05, %v1585_v44 }
 0xf92   :  { %3793 = vrsqrt.f32 %v1588_v45 }
 0xf93   :  { %3795 = vrsqrt.f32 %v1587_v46 }
 0xf9c   :  { %v3794_v22 = vpop.eup %3793 }
 0xf9d   :  { %v3796_v48 = vpop.eup %3795  ;;  %v1592_v49 = vmul.f32 %v3794_v22, %v1576_v32 }
 0xf9e   :  { %v1591_v50 = vmul.f32 %v3796_v48, %v1575_v57 }
 0xf9f   :  { %v1600_v52 = vmul.f32 %v3064_v47, %v1592_v49 }
 0xfa0   :  { %v1599_v53 = vmul.f32 %v3064_v47, %v1591_v50 }
 0xfa1   :  { %v1608_v59 = vadd.f32 %v3065_v51, %v1600_v52 }
 0xfa2   :  { %v1607_v56 = vadd.f32 %v3065_v51, %v1599_v53 }
 0xfa4   :  { %3428 = vmatprep.mubr.msk.f32.mxu1 %vm82_vm0, %v1607_v56  ;;  %3450 = vmatprep.mubr.msk.f32.mxu0 %vm82_vm0, %v1607_v56 }
 0xfa5   :  { %3429 = vmatmul.mubr.msk.f32.vlgmr.msra.gmra.mrb[14].mxu1 %vm82_vm0, %v1608_v59  ;;  %3451 = vmatmul.mubr.msk.f32.vlgmr.msra.gmra.mrb[14].mxu0 %vm82_vm0, %v1608_v59 }
 0xfa6   :  { %3657 = vmatpush3.bf16.msra.mxu1 %v3654_v40  ;;  %3439 = vmatprep.mubr.msk.f32.mxu1 %vm82_vm0, %v1607_v56 }
 0xfa7   :  { %3659 = vmatprep.subr.bf16.mxu1 %v3658_v60 }
 0xfaa   :  { %3661 = vmatpush3.bf16.msra.mxu1 %v3658_v60 }
 0xfad   :  { %3440 = vmatmul.mubr.msk.f32.vlgmr.msra.gmra.mrb[16].mxu1 %vm82_vm0, %v1608_v59 }
0x1078   :  { %v3430_v0 = vpop.f32.mrb[14].mxu1  ;;  %v3452_v1 = vpop.f32.mrb[14].mxu0 }
0x1079   :  { %v1876_v2 = vadd.f32 %v3452_v1, %v3087_v61  ;;  %v1694_v30 = vpop.f32.mrb[15].mxu1  ;;  %v1870_v3 = vpop.f32.mrb[15].mxu0  ;;  %v4373_v12 = vadd.f32 %v3430_v0, %v3071_v62 }
0x107a   :  { %v4352_v4 = vadd.f32 %v3071_v62, %v1694_v30  ;;  %v1871_v26 = vadd.f32 %v3087_v61, %v1870_v3 }
0x107b   :  { %v1880_v33 = vmul.f32 %v4061_v16, %v4373_v12  ;;  %v2074_v13 = vmul.f32 %v4098_v34, %v4373_v12 }
0x107c   :  { %v4354_v7 = vpack.c.bf16 %v1876_v2, %v1871_v26  ;;  %v1879_v20 = vmul.f32 %v4061_v16, %v4352_v4  ;;  %v2073_v58 = vmul.f32 %v4098_v34, %v4352_v4 }
0x107e   :  { %3457 = vmatprep.mubr.msk.f32.mxu1 %vm82_vm0, %v1879_v20  ;;  %3677 = vmatprep.subr.bf16.mxu0 %v4354_v7 }
0x107f   :  { %3679 = vmatpush3.bf16.msra.mxu0 %v4354_v7 }
0x1080   :  { %v3441_v9 = vpop.f32.mrb[16].mxu1  ;;  %3687 = vmatprep.subr.bf16.mxu0 %v4354_v7 }
0x1081   :  { %v1788_v10 = vadd.f32 %v3441_v9, %v3079_v8  ;;  %v1782_v11 = vpop.f32.mrb[17].mxu1  ;;  %v2263_v9 = vmul.f32 %v4148_v19, %v4352_v4 }
0x1082   :  { %v1783_v32 = vadd.f32 %v3079_v8, %v1782_v11 }
0x1084   :  { %v4365_v57 = vpack.c.bf16 %v1788_v10, %v1783_v32  ;;  %v2264_v10 = vmul.f32 %v4148_v19, %v4373_v12 }
0x1086   :  { %3672 = vmatprep.subr.msk.bf16.mxu1 %vm4078_vm1, %v4365_v57 }
0x1087   :  { %3675 = vmatpush3.bf16.xpose.msk.msra.mxu1 %vm4078_vm1, %v4365_v57 }
0x1088   :  { %3682 = vmatprep.subr.msk.bf16.mxu1 %vm4078_vm1, %v4365_v57 }
0x108e   :  { %3458 = vmatmul.mubr.msk.f32.vlgmr.msra.gmra.mrb[18].mxu1 %vm82_vm0, %v1880_v33 }
0x108f   :  { %3685 = vmatpush3.bf16.xpose.msk.msra.mxu1 %vm4078_vm1, %v4365_v57  ;;  %3471 = vmatprep.mubr.msk.f32.mxu1 %vm82_vm0, %v2073_v58 }
0x1090   :  { %3697 = vmatprep.subr.bf16.mxu1 %v4354_v7 }
0x1096   :  { %3472 = vmatmul.mubr.msk.f32.vlgmr.msra.gmra.mrb[20].mxu1 %vm82_vm0, %v2074_v13 }
0x1097   :  { %3699 = vmatpush3.bf16.msra.mxu1 %v4354_v7 }
0x1098   :  { %3702 = vmatprep.subr.msk.bf16.mxu1 %vm4078_vm1, %v4365_v57 }
0x1161   :  { %v3459_v14 = vpop.f32.mrb[18].mxu1 }
0x1162   :  { %v1965_v15 = vadd.f32 %v3459_v14, %v4120_v38  ;;  %v1959_v17 = vpop.f32.mrb[19].mxu1 }
0x1163   :  { %v1960_v18 = vadd.f32 %v1959_v17, %v4125_v39 }
0x1164   :  { %v1971_v21 = vsel %vm529_vm2, %v1965_v15, -inf }
0x1165   :  { %1972 = vmax.xlane.f32.xlu1 %v1971_v21  ;;  %v1968_v23 = vsel %vm529_vm2, %v1960_v18, -inf }
0x1166   :  { %1969 = vmax.xlane.f32.xlu0 %v1968_v23 }
0x1169   :  { %v3473_v24 = vpop.f32.mrb[20].mxu1 }
0x116a   :  { %v2153_v25 = vadd.f32 %v3473_v24, %v4120_v38  ;;  %v2147_v27 = vpop.f32.mrb[21].mxu1 }
0x116b   :  { %v2148_v28 = vadd.f32 %v2147_v27, %v4125_v39 }
0x116c   :  { %v2159_v29 = vsel %vm529_vm2, %v2153_v25, -inf }
0x116d   :  { %2160 = vmax.xlane.f32.xlu1 %v2159_v29  ;;  %v2156_v35 = vsel %vm529_vm2, %v2148_v28, -inf }
0x116e   :  { %2157 = vmax.xlane.f32.xlu0 %v2156_v35 }
0x11f2   :  { %v1973_v36 = vpop.xlane.xlu1 %1972 }
0x11f3   :  { %v1975_v37 = vsub.f32 %v1965_v15, %v1973_v36  ;;  %v1970_v40 = vpop.xlane.xlu0 %1969 }
0x11f4   :  { %v1974_v41 = vsub.f32 %v1960_v18, %v1970_v40 }
0x11f5   :  { %v1978_v42 = vmul.f32 1.442695, %v1975_v37 }
0x11f6   :  { %v1976_v43 = vmul.f32 1.442695, %v1974_v41 }
0x11f7   :  { %3797 = vpow2.f32 %v1978_v42 }
0x11f8   :  { %3799 = vpow2.f32 %v1976_v43 }
0x11fa   :  { %v2161_v44 = vpop.xlane.xlu1 %2160 }
0x11fb   :  { %v2163_v45 = vsub.f32 %v2153_v25, %v2161_v44  ;;  %v2158_v46 = vpop.xlane.xlu0 %2157 }
0x11fc   :  { %v2162_v22 = vsub.f32 %v2148_v28, %v2158_v46 }
0x11fd   :  { %v2166_v47 = vmul.f32 1.442695, %v2163_v45 }
0x11fe   :  { %v2164_v48 = vmul.f32 1.442695, %v2162_v22 }
0x11ff   :  { %3801 = vpow2.f32 %v2166_v47  ;;  %v2453_v47 = vmul.f32 %v4176_v63, %v4352_v4 }
0x1200   :  { %3803 = vpow2.f32 %v2164_v48  ;;  %v2454_v48 = vmul.f32 %v4176_v63, %v4373_v12  ;;  %v3838_v12 = vld [vmem:[%s4601_s30] sm:$0xff] }
0x1201   :  { %v3798_v49 = vpop.eup %3797 }
0x1202   :  { %v3800_v50 = vpop.eup %3799  ;;  %v1983_v51 = vsel %vm529_vm2, %v3798_v49, 0.0 }
0x1203   :  { %1984 = vadd.xlane.f32.xlu1 %v1983_v51  ;;  %v1980_v52 = vsel %vm529_vm2, %v3800_v50, 0.0 }
0x1204   :  { %1981 = vadd.xlane.f32.xlu0 %v1980_v52 }
0x1209   :  { %v3802_v53 = vpop.eup %3801 }
0x120a   :  { %v3804_v54 = vpop.eup %3803  ;;  %v2171_v55 = vsel %vm529_vm2, %v3802_v53, 0.0 }
0x120b   :  { %2172 = vadd.xlane.f32.xlu1 %v2171_v55  ;;  %v2168_v56 = vsel %vm529_vm2, %v3804_v54, 0.0 }
0x120c   :  { %2169 = vadd.xlane.f32.xlu0 %v2168_v56 }
0x1290   :  { %v1985_v59 = vpop.xlane.xlu1 %1984 }
0x1291   :  { %3805 = vrcp.f32 %v1985_v59  ;;  %v1982_v60 = vpop.xlane.xlu0 %1981 }
0x1292   :  { %3807 = vrcp.f32 %v1982_v60 }
0x1298   :  { %v2173_v61 = vpop.xlane.xlu1 %2172 }
0x1299   :  { %3809 = vrcp.f32 %v2173_v61  ;;  %v2170_v62 = vpop.xlane.xlu0 %2169 }
0x129a   :  { %3811 = vrcp.f32 %v2170_v62 }
0x129b   :  { %v3806_v0 = vpop.eup %3805 }
0x129c   :  { %v3808_v1 = vpop.eup %3807  ;;  %v1989_v30 = vmul.f32 %v3806_v0, %v3798_v49 }
0x129d   :  { %v1988_v2 = vmul.f32 %v3808_v1, %v3800_v50 }
0x129f   :  { %3464 = vmatprep.mubr.msk.f32.mxu0 %vm529_vm2, %v1988_v2 }
0x12a0   :  { %3465 = vmatmul.mubr.msk.f32.vlgmr.msra.gmra.mrb[16].mxu0 %vm529_vm2, %v1989_v30 }
0x12a1   :  { %3689 = vmatpush3.bf16.msra.mxu0 %v4354_v7 }
0x12a2   :  { %3692 = vmatprep.subr.msk.bf16.mxu0 %vm4078_vm1, %v4365_v57 }
0x12a3   :  { %v3810_v3 = vpop.eup %3809 }
0x12a4   :  { %v3812_v26 = vpop.eup %3811  ;;  %v2177_v8 = vmul.f32 %v3810_v3, %v3802_v53 }
0x12a5   :  { %v2176_v20 = vmul.f32 %v3812_v26, %v3804_v54 }
0x12a7   :  { %3478 = vmatprep.mubr.msk.f32.mxu0 %vm529_vm2, %v2176_v20 }
0x12a8   :  { %3479 = vmatmul.mubr.msk.f32.vlgmr.msra.gmra.mrb[18].mxu0 %vm529_vm2, %v2177_v8  ;;  %v3114_v8 = vld [vmem:[%s4575_s13 + $0x20] sm:$0xff] }
0x12a9   :  { %3485 = vmatprep.mubr.msk.f32.mxu0 %vm82_vm0, %v2263_v9  ;;  %v3115_v9 = vld [vmem:[%s4575_s13 + $0x28] sm:$0xff] }
0x12aa   :  { %3695 = vmatpush3.bf16.xpose.msk.msra.mxu0 %vm4078_vm1, %v4365_v57 }
0x12ab   :  { %3707 = vmatprep.subr.bf16.mxu0 %v4354_v7 }
0x12b1   :  { %3486 = vmatmul.mubr.msk.f32.vlgmr.msra.gmra.mrb[20].mxu0 %vm82_vm0, %v2264_v10  ;;  %v3710_v10 = vpack.c.bf16 %v3115_v9, %v3114_v8  ;;  %v3138_v9 = vld [vmem:[%s4581_s19 + $0x60] sm:$0xff] }
0x12b2   :  { %3709 = vmatpush3.bf16.msra.mxu0 %v4354_v7 }
0x12b3   :  { %3711 = vmatprep.subr.bf16.mxu0 %v3710_v10 }
0x1373   :  { %v3466_v11 = vpop.f32.mrb[16].mxu0 }
0x1374   :  { %v2062_v32 = vpop.f32.mrb[17].mxu0  ;;  %v2072_v58 = vmul.f32 %v3466_v11, %v4061_v16 }
0x1375   :  { %v2071_v15 = vmul.f32 %v4061_v16, %v2062_v32 }
0x137b   :  { %v3480_v33 = vpop.f32.mrb[18].mxu0 }
0x137c   :  { %v2260_v13 = vmul.f32 %v3480_v33, %v4098_v34  ;;  %v2250_v14 = vpop.f32.mrb[19].mxu0 }
0x137d   :  { %v2259_v17 = vmul.f32 %v4098_v34, %v2250_v14 }
0x137e   :  { %v2262_v18 = vadd.f32 %v2260_v13, %v2072_v58 }
0x137f   :  { %v2261_v21 = vadd.f32 %v2259_v17, %v2071_v15  ;;  %v3116_v15 = vld [vmem:[%s4575_s13 + $0x30] sm:$0xff]  ;;  %v3117_v17 = vld [vmem:[%s4575_s13 + $0x38] sm:$0xff] }
0x1384   :  { %v3487_v23 = vpop.f32.mrb[20].mxu0 }
0x1385   :  { %v2343_v24 = vadd.f32 %v3487_v23, %v4120_v38  ;;  %v2337_v25 = vpop.f32.mrb[21].mxu0 }
0x1386   :  { %v2338_v7 = vadd.f32 %v2337_v25, %v4125_v39 }
0x1387   :  { %v2349_v27 = vsel %vm529_vm2, %v2343_v24, -inf }
0x1388   :  { %2350 = vmax.xlane.f32.xlu1 %v2349_v27  ;;  %v2346_v28 = vsel %vm529_vm2, %v2338_v7, -inf }
0x1389   :  { %2347 = vmax.xlane.f32.xlu0 %v2346_v28  ;;  %v3119_v28 = vld [vmem:[%s4576_s14 + $0x1] ss:$0 sm:$0xff] }
0x1415   :  { %v2351_v29 = vpop.xlane.xlu1 %2350 }
0x1416   :  { %v2353_v35 = vsub.f32 %v2343_v24, %v2351_v29  ;;  %v2348_v36 = vpop.xlane.xlu0 %2347 }
0x1417   :  { %v2352_v16 = vsub.f32 %v2338_v7, %v2348_v36 }
0x1418   :  { %v2356_v37 = vmul.f32 1.442695, %v2353_v35 }
0x1419   :  { %v2354_v34 = vmul.f32 1.442695, %v2352_v16 }
0x141a   :  { %3813 = vpow2.f32 %v2356_v37 }
0x141b   :  { %3815 = vpow2.f32 %v2354_v34 }
0x1424   :  { %v3814_v40 = vpop.eup %3813 }
0x1425   :  { %v3816_v41 = vpop.eup %3815  ;;  %v2361_v38 = vsel %vm529_vm2, %v3814_v40, 0.0 }
0x1426   :  { %2362 = vadd.xlane.f32.xlu1 %v2361_v38  ;;  %v2358_v39 = vsel %vm529_vm2, %v3816_v41, 0.0 }
0x1427   :  { %2359 = vadd.xlane.f32.xlu0 %v2358_v39 }
0x14b3   :  { %v2363_v42 = vpop.xlane.xlu1 %2362 }
0x14b4   :  { %3817 = vrcp.f32 %v2363_v42  ;;  %v2360_v43 = vpop.xlane.xlu0 %2359 }
0x14b5   :  { %3819 = vrcp.f32 %v2360_v43 }
0x14be   :  { %v3818_v44 = vpop.eup %3817 }
0x14bf   :  { %v3820_v45 = vpop.eup %3819  ;;  %v2367_v22 = vmul.f32 %v3818_v44, %v3814_v40 }
0x14c0   :  { %v2366_v46 = vmul.f32 %v3820_v45, %v3816_v41 }
0x14c2   :  { %3492 = vmatprep.mubr.msk.f32.mxu1 %vm529_vm2, %v2366_v46 }
0x14c3   :  { %3493 = vmatmul.mubr.msk.f32.vlgmr.msra.gmra.mrb[22].mxu1 %vm529_vm2, %v2367_v22  ;;  %v3126_v22 = vld [vmem:[%s4579_s17 + $0x20] sm:$0xff] }
0x14c4   :  { %3705 = vmatpush3.bf16.xpose.msk.msra.mxu1 %vm4078_vm1, %v4365_v57  ;;  %3499 = vmatprep.mubr.msk.f32.mxu1 %vm82_vm0, %v2453_v47  ;;  %v3127_v47 = vld [vmem:[%s4579_s17 + $0x28] sm:$0xff] }
0x14cb   :  { %3500 = vmatmul.mubr.msk.f32.vlgmr.msra.gmra.mrb[24].mxu1 %vm82_vm0, %v2454_v48  ;;  %v3718_v48 = vpack.c.bf16 %v3127_v47, %v3126_v22 }
0x14cd   :  { %3719 = vmatprep.subr.bf16.mxu1 %v3718_v48 }
0x14ce   :  { %3721 = vmatpush3.bf16.msra.mxu1 %v3718_v48 }
0x1596   :  { %v3494_v49 = vpop.f32.mrb[22].mxu1 }
0x1597   :  { %v2450_v50 = vmul.f32 %v3494_v49, %v4148_v19  ;;  %v2440_v51 = vpop.f32.mrb[23].mxu1  ;;  %v3128_v49 = vld [vmem:[%s4579_s17 + $0x30] sm:$0xff] }
0x1598   :  { %v2449_v52 = vmul.f32 %v4148_v19, %v2440_v51 }
0x1599   :  { %v2452_v4 = vadd.f32 %v2450_v50, %v2262_v18  ;;  %v3714_v18 = vpack.c.bf16 %v3117_v17, %v3116_v15  ;;  %v3129_v50 = vld [vmem:[%s4579_s17 + $0x38] sm:$0xff] }
0x159a   :  { %v2451_v53 = vadd.f32 %v2449_v52, %v2261_v21  ;;  %v3722_v51 = vpack.c.bf16 %v3129_v50, %v3128_v49 }
0x159c   :  { %3723 = vmatprep.subr.bf16.mxu1 %v3722_v51 }
0x159d   :  { %3725 = vmatpush3.bf16.msra.mxu1 %v3722_v51 }
0x159e   :  { %v3501_v54 = vpop.f32.mrb[24].mxu1 }
0x159f   :  { %v2533_v57 = vadd.f32 %v3837_v31, %v3501_v54  ;;  %v2527_v55 = vpop.f32.mrb[25].mxu1 }
0x15a0   :  { %v2528_v56 = vadd.f32 %v3838_v12, %v2527_v55  ;;  %v3124_v12 = vld [vmem:[%s4577_s15 + $0x1] ss:$0 sm:$0xff] }
0x15a1   :  { %v2539_v59 = vsel %vm529_vm2, %v2533_v57, -inf }
0x15a2   :  { %2540 = vmax.xlane.f32.xlu1 %v2539_v59  ;;  %v2536_v60 = vsel %vm529_vm2, %v2528_v56, -inf }
0x15a3   :  { %2537 = vmax.xlane.f32.xlu0 %v2536_v60 }
0x162f   :  { %v2541_v19 = vpop.xlane.xlu1 %2540 }
0x1630   :  { %v2543_v61 = vsub.f32 %v2533_v57, %v2541_v19  ;;  %v2538_v62 = vpop.xlane.xlu0 %2537  ;;  %v3125_v19 = vld [vmem:[%s4578_s16 + $0x1] ss:$0 sm:$0xff] }
0x1631   :  { %v2542_v0 = vsub.f32 %v2528_v56, %v2538_v62 }
0x1632   :  { %v2546_v1 = vmul.f32 1.442695, %v2543_v61 }
0x1633   :  { %v2544_v2 = vmul.f32 1.442695, %v2542_v0 }
0x1634   :  { %3821 = vpow2.f32 %v2546_v1 }
0x1635   :  { %3823 = vpow2.f32 %v2544_v2  ;;  %v3134_v2 = vld [vmem:[%s4581_s19 + $0x40] sm:$0xff] }
0x163e   :  { %v3822_v30 = vpop.eup %3821 }
0x163f   :  { %v3824_v3 = vpop.eup %3823  ;;  %v2551_v26 = vsel %vm529_vm2, %v3822_v30, 0.0 }
0x1640   :  { %2552 = vadd.xlane.f32.xlu1 %v2551_v26  ;;  %v2548_v20 = vsel %vm529_vm2, %v3824_v3, 0.0  ;;  %v3136_v26 = vld [vmem:[%s4581_s19 + $0x50] sm:$0xff] }
0x1641   :  { %2549 = vadd.xlane.f32.xlu0 %v2548_v20  ;;  %v3137_v20 = vld [vmem:[%s4581_s19 + $0x58] sm:$0xff] }
0x1642   :  { %v3730_v8 = vpack.c.bf16 %v3137_v20, %v3136_v26 }
0x16cd   :  { %v2553_v11 = vpop.xlane.xlu1 %2552 }
0x16ce   :  { %3825 = vrcp.f32 %v2553_v11  ;;  %v2550_v32 = vpop.xlane.xlu0 %2549 }
0x16cf   :  { %3827 = vrcp.f32 %v2550_v32  ;;  %v3140_v32 = vld [vmem:[%s4581_s19 + $0x70] sm:$0xff] }
0x16d8   :  { %v3826_v33 = vpop.eup %3825 }
0x16d9   :  { %v3828_v58 = vpop.eup %3827  ;;  %v2557_v14 = vmul.f32 %v3826_v33, %v3822_v30  ;;  %v3135_v30 = vld [vmem:[%s4581_s19 + $0x48] sm:$0xff]  ;;  %v3141_v33 = vld [vmem:[%s4581_s19 + $0x78] sm:$0xff] }
0x16da   :  { %v2556_v13 = vmul.f32 %v3828_v58, %v3824_v3  ;;  %v3726_v3 = vpack.c.bf16 %v3135_v30, %v3134_v2  ;;  %v3738_v58 = vpack.c.bf16 %v3141_v33, %v3140_v32 }
0x16dc   :  { %3506 = vmatprep.mubr.msk.f32.mxu0 %vm529_vm2, %v2556_v13  ;;  %v3131_v13 = vld [vmem:[%s4580_s18 + $0x1] ss:$0 sm:$0xff] }
0x16dd   :  { %3507 = vmatmul.mubr.msk.f32.vlgmr.msra.gmra.mrb[22].mxu0 %vm529_vm2, %v2557_v14 }
0x16de   :  { %3713 = vmatpush3.bf16.msra.mxu0 %v3710_v10  ;;  %v3139_v10 = vld [vmem:[%s4581_s19 + $0x68] sm:$0xff] }
0x16df   :  { %3715 = vmatprep.subr.bf16.mxu0 %v3714_v18  ;;  %v3734_v11 = vpack.c.bf16 %v3139_v10, %v3138_v9 }
0x16e2   :  { %3717 = vmatpush3.bf16.msra.mxu0 %v3714_v18 }
0x16e3   :  { %3727 = vmatprep.subr.bf16.mxu0 %v3726_v3 }
0x17b0   :  { %v3508_v21 = vpop.f32.mrb[22].mxu0 }
0x17b1   :  { %v2640_v23 = vmul.f32 %v3508_v21, %v4176_v63  ;;  %v2630_v24 = vpop.f32.mrb[23].mxu0 }
0x17b2   :  { %v2639_v25 = vmul.f32 %v4176_v63, %v2630_v24 }
0x17b3   :  { %v2642_v7 = vadd.f32 %v2640_v23, %v2452_v4 }
0x17b4   :  { %v2641_v27 = vadd.f32 %v2639_v25, %v2451_v53 }
0x17b6   :  { %3517 = vmatprep.mubr.msk.f32.mxu0 %vm82_vm0, %v2641_v27 }
0x17b7   :  { %3518 = vmatmul.mubr.msk.f32.vlgmr.msra.gmra.mrb[24].mxu0 %vm82_vm0, %v2642_v7 }
0x17b8   :  { %3729 = vmatpush3.bf16.msra.mxu0 %v3726_v3 }
0x17b9   :  { %3731 = vmatprep.subr.bf16.mxu0 %v3730_v8 }
0x17bc   :  { %3733 = vmatpush3.bf16.msra.mxu0 %v3730_v8 }
0x17bd   :  { %3735 = vmatprep.subr.bf16.mxu0 %v3734_v11 }
0x17c0   :  { %3737 = vmatpush3.bf16.msra.mxu0 %v3734_v11 }
0x17c1   :  { %3739 = vmatprep.subr.bf16.mxu0 %v3738_v58 }
0x17c4   :  { %3741 = vmatpush3.bf16.msra.mxu0 %v3738_v58 }
0x188a   :  { %v3519_v29 = vpop.f32.mrb[24].mxu0 }
0x188b   :  { %v2734_v35 = vadd.f32 %v3519_v29, %v3119_v28  ;;  %v2728_v36 = vpop.f32.mrb[25].mxu0 }
0x188c   :  { %v2729_v16 = vadd.f32 %v3119_v28, %v2728_v36 }
0x188d   :  { %v4481_v37 = vadd.f32 %v2734_v35, %v4285_v5 }
0x188e   :  { %v4484_v34 = vadd.f32 %v2729_v16, %v4288_v6  ;;  %v3143_v16 = vld [vmem:[%s4582_s20 + $0x1] ss:$0 sm:$0xff] }
0x188f   :  { %v2746_v63 = vsel %vm82_vm0, %v4481_v37, 0.0 }
0x1890   :  { %2747 = vadd.xlane.f32.xlu1 %v2746_v63  ;;  %v2743_v40 = vsel %vm82_vm0, %v4484_v34, 0.0 }
0x1891   :  { %2744 = vadd.xlane.f32.xlu0 %v2743_v40 }
0x191d   :  { %v2748_v41 = vpop.xlane.xlu1 %2747 }
0x191e   :  { %v2750_v38 = vmul.f32 0.03125, %v2748_v41  ;;  %v2745_v39 = vpop.xlane.xlu0 %2744 }
0x191f   :  { %v2749_v42 = vmul.f32 0.03125, %v2745_v39 }
0x1920   :  { %v2752_v43 = vsub.f32 %v4481_v37, %v2750_v38 }
0x1921   :  { %v2751_v5 = vsub.f32 %v4484_v34, %v2749_v42 }
0x1922   :  { %v2754_v44 = vmul.f32 %v2752_v43, %v2752_v43 }
0x1923   :  { %v2753_v45 = vmul.f32 %v2751_v5, %v2751_v5 }
0x1924   :  { %v2758_v6 = vsel %vm82_vm0, %v2754_v44, 0.0 }
0x1925   :  { %2759 = vadd.xlane.f32.xlu1 %v2758_v6  ;;  %v2755_v46 = vsel %vm82_vm0, %v2753_v45, 0.0 }
0x1926   :  { %2756 = vadd.xlane.f32.xlu0 %v2755_v46 }
0x19b2   :  { %v2760_v52 = vpop.xlane.xlu1 %2759 }
0x19b3   :  { %v2762_v4 = vmul.f32 0.03125, %v2760_v52  ;;  %v2757_v53 = vpop.xlane.xlu0 %2756 }
0x19b4   :  { %v2761_v54 = vmul.f32 0.03125, %v2757_v53 }
0x19b5   :  { %v2764_v31 = vadd.f32 1e-05, %v2762_v4 }
0x19b6   :  { %v2763_v57 = vadd.f32 1e-05, %v2761_v54 }
0x19b7   :  { %3829 = vrsqrt.f32 %v2764_v31 }
0x19b8   :  { %3831 = vrsqrt.f32 %v2763_v57 }
0x19c1   :  { %v3830_v55 = vpop.eup %3829 }
0x19c2   :  { %v3832_v56 = vpop.eup %3831  ;;  %v2768_v59 = vmul.f32 %v3830_v55, %v2752_v43 }
0x19c3   :  { %v2767_v60 = vmul.f32 %v3832_v56, %v2751_v5 }
0x19c4   :  { %v2776_v61 = vmul.f32 %v3124_v12, %v2768_v59 }
0x19c5   :  { %v2775_v62 = vmul.f32 %v3124_v12, %v2767_v60 }
0x19c6   :  { %v2784_v1 = vadd.f32 %v3125_v19, %v2776_v61 }
0x19c7   :  { %v2783_v0 = vadd.f32 %v3125_v19, %v2775_v62 }
0x19c9   :  { %3528 = vmatprep.mubr.msk.f32.mxu1 %vm82_vm0, %v2783_v0 }
0x19ca   :  { %3529 = vmatmul.mubr.msk.f32.vlgmr.msra.gmra.mrb[26].mxu1 %vm82_vm0, %v2784_v1 }
0x1a9d   :  { %v3530_v14 = vpop.f32.mrb[26].mxu1 }
0x1a9e   :  { %v2876_v15 = vadd.f32 %v3530_v14, %v3131_v13  ;;  %v2870_v17 = vpop.f32.mrb[27].mxu1 }
0x1a9f   :  { %v2871_v18 = vadd.f32 %v3131_v13, %v2870_v17 }
0x1aa0   :  { %v2882_v21 = vmul.f32 0.70710677, %v2876_v15  ;;  %v2880_v29 = vmul.f32 0.5, %v2876_v15 }
0x1aa1   :  { %v2881_v23 = vmul.f32 0.70710677, %v2871_v18  ;;  %v2879_v27 = vmul.f32 0.5, %v2871_v18 }
0x1aa2   :  { %3833 = verf.f32 %v2882_v21 }
0x1aa3   :  { %3835 = verf.f32 %v2881_v23 }
0x1aac   :  { %v3834_v24 = vpop.eup %3833 }
0x1aad   :  { %v3836_v25 = vpop.eup %3835  ;;  %v2886_v7 = vadd.f32 1.0, %v3834_v24 }
0x1aae   :  { %v2885_v28 = vadd.f32 1.0, %v3836_v25 }
0x1aaf   :  { %v2888_v36 = vmul.f32 %v2886_v7, %v2880_v29 }
0x1ab0   :  { %v2887_v35 = vmul.f32 %v2885_v28, %v2879_v27 }
0x1ab2   :  { %3547 = vmatprep.mubr.msk.f32.mxu0 %vm1479_vm3, %v2887_v35 }
0x1ab3   :  { %3548 = vmatmul.mubr.msk.f32.vlgmr.msra.gmra.mrb[26].mxu0 %vm1479_vm3, %v2888_v36 }
0x1b86   :  { %v3549_v63 = vpop.f32.mrb[26].mxu0 }
0x1b87   :  { %v2984_v40 = vadd.f32 %v3549_v63, %v3143_v16  ;;  %v2978_v41 = vpop.f32.mrb[27].mxu0 }
0x1b88   :  { %v2979_v38 = vadd.f32 %v3143_v16, %v2978_v41 }
0x1b89   :  { %v2988_v39 = vadd.f32 %v2984_v40, %v4481_v37 }
0x1b8a   :  { %v2987_v42 = vadd.f32 %v2979_v38, %v4484_v34 }
0x1b8b   :  { %2990 = vst.msk [vmem:[#allocation2 + $0x8] sm:$0xff] %vm82_vm0, %v2988_v39 }
0x1b8c   :  { %2989 = vst.msk [vmem:[#allocation2] sm:$0xff] %vm82_vm0, %v2987_v42 }
0x1b8d   :  { %3850 = shalt.err (!%p3847_p4)
}
0x1b8e   :  { %s3851_s28 = scalar_lea.hbm %s4583_s21, 256 }
0x1b8f   :  { %p3852_p5 = scmp.ne.s32.totalorder %s4583_s21, %s3851_s28  ;;  %p3855_p6 = scmp.lt.u32.totalorder %s3851_s28, %s4583_s21 }
0x1b91   :  { %p3857_p7 = pnand %p3855_p6, %p3852_p5 }
0x1b93   :  { %3860 = shalt.err (!%p3857_p7)
}
0x1b94   :  { %s3864_s10 = smov 128   ;;  %s3865_s0 = smov 8  }
0x1b95   :  { %3002 = dma.vmem_to_hbm [thread:$0]  %s2997_s6, 256, %s4583_s21, [#allocation3], %s3864_s10, %s3864_s10, %s3865_s0  }
0x1b96   :  { %3861 = dma.done.wait [#allocation3], 256  }
0x1b97   :  { %3862 = vsyncadd [#allocation3], 4294967040 }
0x1b98   :  { %3006 = vsyncpa [#allocation3], 1 }

</bundles_post_ra>
